<compile_context>
chip_gen: v7x
topology: tpu7x:2x2x1
jax: 0.10.0
libtpu: 0.0.40
codegen_flags: <defaults>
</compile_context>

<pallas_src>
import jax
import jax.numpy as jnp
from jax import lax
from jax.experimental import pallas as pl
from jax.experimental.pallas import tpu as pltpu

# ----- hyper-parameters from the PyTorch module -----
CLASS_NUM = 4
EMBEDDING_DIM = 128
KERNEL_NUM = 100
KERNEL_SIZES = [1, 2, 3, 4]
VOCAB_SIZE = 8268
HIDDEN = 100
BN_EPS = 1e-5

NUM_BR = len(KERNEL_SIZES)
K_PAD = 128          # KERNEL_NUM padded to lane width
H_PAD = 128          # HIDDEN / class dim padded to lane width


# --------------------------------------------------------------------------
# Fused kernel: embedding gather (DMA) + conv branches + pool + fc + log-softmax
# --------------------------------------------------------------------------
def _make_fused_kernel(batch, seq_len):
    bl = batch * seq_len
    GATHER_CHUNK = 32   # bound the number of in-flight row DMAs

    def kernel(tok_ref, emb_hbm, wslab_ref, cshift_ref, fcw1_ref, fcwr_ref,
               fcb_ref, out_ref, ebuf, sem):
        # tok_ref:   [B*L] int32 in SMEM (scalar prefetch)
        # emb_hbm:   [VOCAB, D] f32 in HBM (memory_space=pl.ANY)
        # wslab_ref: [D, sum(ks)*K_PAD] bf16   (BN scale folded into conv weights)
        # cshift_ref:[NUM_BR, K_PAD] f32       (folded conv bias + BN shift)
        # fcw1_ref:  [NUM_BR*K_PAD, H_PAD] bf16, fcwr_ref: [4, H_PAD, H_PAD] bf16
        # fcb_ref:   [5, H_PAD] f32
        # ebuf:      [B*L, D] f32 VMEM scratch (gathered embedding rows)

        # ---- fused embedding gather: chunked per-row DMAs from the HBM table ----
        for lo in range(0, bl, GATHER_CHUNK):
            hi = min(bl, lo + GATHER_CHUNK)

            @pl.loop(lo, hi)
            def _start(r):
                pltpu.make_async_copy(emb_hbm.at[tok_ref[r]], ebuf.at[r],
                                      sem.at[0]).start()

            @pl.loop(lo, hi)
            def _wait(r):
                # all copies share one sem and have identical byte counts, so
                # (hi-lo) waits guarantee the whole chunk has landed.
                pltpu.make_async_copy(emb_hbm.at[0], ebuf.at[0], sem.at[0]).wait()

        emb = ebuf[...].astype(jnp.bfloat16)                 # [B*L, D] MXU operand
        cshift = cshift_ref[...]                             # [NUM_BR, K_PAD] f32
        pos = lax.broadcasted_iota(jnp.int32, (bl, 1), 0) % seq_len

        # ---- conv branches: one lane-dense bf16 MXU matmul per branch -----------
        pooled = []
        col = 0
        for br, ks in enumerate(KERNEL_SIZES):
            zb = jnp.dot(emb, wslab_ref[:, col:col + ks * K_PAD],
                         preferred_element_type=jnp.float32)  # [B*L, ks*128] f32
            col += ks * K_PAD
            acc = zb[:, 0:K_PAD]
            for i in range(1, ks):
                # row r <- row r+i via XLU sublane rotation (cheap, no VALU cost)
                acc = acc + pltpu.roll(zb[:, i * K_PAD:(i + 1) * K_PAD],
                                       bl - i, axis=0)
            y = jnp.maximum(acc + cshift[br:br + 1, :], 0.0)  # bias+BN + ReLU (f32)
            # rows with pos >= L-ks+1 are invalid (incl. cross-batch wrap from the
            # roll); ReLU output >= 0 so masking with 0 preserves the pooled max.
            # NOTE: this relies on the activation being ReLU; if it ever changes,
            # mask with -inf instead.
            y = jnp.where(pos < (seq_len - ks + 1), y, 0.0)
            # F.max_pool1d over the whole conv length -> [B, K_PAD]
            pooled.append(jnp.max(y.reshape(batch, seq_len, K_PAD), axis=1))

        x = jnp.concatenate(pooled, axis=1).astype(jnp.bfloat16)   # [B, 512]

        # ---- fc stack: Linear+BN folded, Dropout = identity (eval) --------------
        fcb = fcb_ref[...]                                    # [5, H_PAD] f32
        h = jnp.maximum(
            jnp.dot(x, fcw1_ref[...], preferred_element_type=jnp.float32)
            + fcb[0:1, :], 0.0)
        for li in range(3):
            h = jnp.maximum(
                jnp.dot(h.astype(jnp.bfloat16), fcwr_ref[li],
                        preferred_element_type=jnp.float32)
                + fcb[li + 1:li + 2, :], 0.0)
        logits = (jnp.dot(h.astype(jnp.bfloat16), fcwr_ref[3],
                          preferred_element_type=jnp.float32)
                  + fcb[4:5, :])                              # [B, H_PAD] f32

        # ---- LogSoftmax(dim=1) over the CLASS_NUM real columns (all f32) --------
        cls = lax.broadcasted_iota(jnp.int32, logits.shape, 1)
        logits = jnp.where(cls < CLASS_NUM, logits, jnp.float32(-1e30))
        m = jnp.max(logits, axis=1, keepdims=True)
        lse = jnp.log(jnp.sum(jnp.exp(logits - m), axis=1, keepdims=True)) + m
        out_ref[...] = logits - lse                           # lane-dense [B, H_PAD]

    return kernel


# --------------------------------------------------------------------------
# One-time (model-load) weight preparation: fold BN, pad to lanes, cast to bf16
# --------------------------------------------------------------------------
def _pad_last(x, n):
    return jnp.pad(x, [(0, 0)] * (x.ndim - 1) + [(0, n - x.shape[-1])])


def prepare_kernel_params(params):
    """Call ONCE at model load; returns the pre-built kernel operand pytree."""
    # conv branches -> one [D, sum(ks)*K_PAD] bf16 weight slab + per-branch shifts
    blocks, shifts = [], []
    for ks, (w, b, s, t) in zip(KERNEL_SIZES, params["convs"]):
        wf = w * s[None, None, :]                    # fold BN scale into conv weights
        sh = b * s + t                               # folded conv bias + BN shift
        for i in range(ks):
            blocks.append(_pad_last(wf[i], K_PAD))   # [D, K_PAD]
        shifts.append(_pad_last(sh[None, :], K_PAD))
    w_slab = jnp.concatenate(blocks, axis=1).astype(jnp.bfloat16)   # [D, 10*K_PAD]
    c_shift = jnp.concatenate(shifts, axis=0).astype(jnp.float32)   # [NUM_BR, K_PAD]

    # fc1: remap rows onto the padded concat layout [branch][k_pad]
    w, b, s, t = params["fc"][0]
    wf = (w * s[None, :]).reshape(NUM_BR, KERNEL_NUM, HIDDEN)
    fc_w1 = jnp.pad(wf, ((0, 0), (0, K_PAD - KERNEL_NUM), (0, H_PAD - HIDDEN))
                    ).reshape(NUM_BR * K_PAD, H_PAD).astype(jnp.bfloat16)   # [512,128]
    fc_b = [_pad_last((b * s + t)[None, :], H_PAD)]

    rest = []
    for (w, b, s, t) in params["fc"][1:]:
        wf = w * s[None, :]
        rest.append(jnp.pad(wf, ((0, H_PAD - wf.shape[0]), (0, H_PAD - wf.shape[1]))))
        fc_b.append(_pad_last((b * s + t)[None, :], H_PAD))
    fc_wr = jnp.stack(rest, axis=0).astype(jnp.bfloat16)            # [4, 128, 128]
    fc_b = jnp.concatenate(fc_b, axis=0).astype(jnp.float32)        # [5, 128]

    return dict(
        emb=params["emb"].astype(jnp.float32),   # stays in HBM; rows DMA'd in-kernel
        w_slab=w_slab, c_shift=c_shift, fc_w1=fc_w1, fc_wr=fc_wr, fc_b=fc_b)


# --------------------------------------------------------------------------
# Forward wrapper (jit-able): tokens [B, L] int32 + pre-built kernel params
# --------------------------------------------------------------------------
def textcnn_forward(tokens, kp):
    B, L = tokens.shape
    bl = B * L
    D = EMBEDDING_DIM

    conv_flops = 2 * bl * D * sum(KERNEL_SIZES) * K_PAD
    fc_flops = 2 * B * (NUM_BR * K_PAD * H_PAD + 4 * H_PAD * H_PAD)
    bytes_acc = (kp["w_slab"].size * 2 + kp["fc_w1"].size * 2 + kp["fc_wr"].size * 2
                 + (kp["c_shift"].size + kp["fc_b"].size) * 4
                 + bl * (D * 4 + 4) + B * H_PAD * 4)
    cost = pl.CostEstimate(flops=conv_flops + fc_flops,
                           transcendentals=B * H_PAD,
                           bytes_accessed=bytes_acc)

    grid_spec = pltpu.PrefetchScalarGridSpec(
        num_scalar_prefetch=1,                     # tokens -> SMEM
        grid=(1,),
        in_specs=[
            pl.BlockSpec(memory_space=pl.ANY),                          # emb table (HBM)
            pl.BlockSpec(kp["w_slab"].shape, lambda i, tok: (0, 0)),
            pl.BlockSpec(kp["c_shift"].shape, lambda i, tok: (0, 0)),
            pl.BlockSpec(kp["fc_w1"].shape, lambda i, tok: (0, 0)),
            pl.BlockSpec(kp["fc_wr"].shape, lambda i, tok: (0, 0, 0)),
            pl.BlockSpec(kp["fc_b"].shape, lambda i, tok: (0, 0)),
        ],
        out_specs=pl.BlockSpec((B, H_PAD), lambda i, tok: (0, 0)),
        scratch_shapes=[pltpu.VMEM((bl, D), jnp.float32),   # gathered embedding rows
                        pltpu.SemaphoreType.DMA((1,))],
    )

    out = pl.pallas_call(
        _make_fused_kernel(B, L),
        out_shape=jax.ShapeDtypeStruct((B, H_PAD), jnp.float32),
        grid_spec=grid_spec,
        compiler_params=pltpu.CompilerParams(dimension_semantics=("arbitrary",)),
        cost_estimate=cost,
    )(tokens.reshape(bl).astype(jnp.int32), kp["emb"], kp["w_slab"], kp["c_shift"],
      kp["fc_w1"], kp["fc_wr"], kp["fc_b"])

    # padded class columns hold ~-1e30 - lse; only the first CLASS_NUM are valid.
    return out[:, :CLASS_NUM]                                 # [B, 4] log-probs


# --------------------------------------------------------------------------
# Parameter construction (deterministic, synthetic) + pure-JAX f32 reference
# --------------------------------------------------------------------------
def _fold_bn(gamma, beta, mean, var):
    scale = gamma / jnp.sqrt(var + BN_EPS)
    shift = beta - mean * scale
    return scale, shift


def _bn_params(key, n):
    k1, k2, k3, k4 = jax.random.split(key, 4)
    gamma = jax.random.uniform(k1, (n,), jnp.float32, 0.5, 1.5)
    beta = 0.1 * jax.random.normal(k2, (n,), jnp.float32)
    mean = 0.1 * jax.random.normal(k3, (n,), jnp.float32)
    var = jax.random.uniform(k4, (n,), jnp.float32, 0.5, 1.5)
    return _fold_bn(gamma, beta, mean, var)


def init_params(key):
    keys = jax.random.split(key, 24)
    params = {}
    params["emb"] = 0.1 * jax.random.normal(
        keys[0], (VOCAB_SIZE, EMBEDDING_DIM), jnp.float32)

    convs = []
    for i, ks in enumerate(KERNEL_SIZES):
        kw, kb, kbn = jax.random.split(keys[1 + i], 3)
        w = 0.05 * jax.random.normal(kw, (ks, EMBEDDING_DIM, KERNEL_NUM), jnp.float32)
        b = 0.05 * jax.random.normal(kb, (KERNEL_NUM,), jnp.float32)
        s, t = _bn_params(kbn, KERNEL_NUM)
        convs.append((w, b, s, t))
    params["convs"] = convs

    dims = [(KERNEL_NUM * NUM_BR, HIDDEN),
            (HIDDEN, HIDDEN), (HIDDEN, HIDDEN), (HIDDEN, HIDDEN),
            (HIDDEN, CLASS_NUM)]
    fc = []
    for i, (din, dout) in enumerate(dims):
        kw, kb, kbn = jax.random.split(keys[10 + i], 3)
        w = 0.05 * jax.random.normal(kw, (din, dout), jnp.float32)
        b = 0.05 * jax.random.normal(kb, (dout,), jnp.float32)
        s, t = _bn_params(kbn, dout)
        fc.append((w, b, s, t))
    params["fc"] = fc
    return params


def reference_forward(tokens, params):
    """Unfused/unfolded f32 math (mirrors the PyTorch module) for validation."""
    emb = params["emb"][tokens].astype(jnp.float32)
    B, L, _ = emb.shape
    feats = []
    for ks, (w, b, s, t) in zip(KERNEL_SIZES, params["convs"]):
        l_out = L - ks + 1
        acc = jnp.zeros((B, l_out, KERNEL_NUM), jnp.float32)
        for i in range(ks):
            acc = acc + jnp.einsum("bld,dk->blk", emb[:, i:i + l_out, :], w[i])
        y = jnp.maximum((acc + b) * s + t, 0.0)
        feats.append(jnp.max(y, axis=1))
    x = jnp.concatenate(feats, axis=1)
    for li, (w, b, s, t) in enumerate(params["fc"]):
        x = (jnp.dot(x, w) + b) * s + t
        if li < len(params["fc"]) - 1:
            x = jnp.maximum(x, 0.0)
    return jax.nn.log_softmax(x, axis=1)


if __name__ == "__main__":
    key = jax.random.PRNGKey(0)
    k_param, k_tok = jax.random.split(key)
    params = init_params(k_param)

    # One-time (model-load) weight preparation -- NOT in the per-call path.
    kp = prepare_kernel_params(params)
    kp = jax.tree_util.tree_map(jax.block_until_ready, kp)

    B, L = 4, 16
    tokens = jax.random.randint(k_tok, (B, L), 0, VOCAB_SIZE, dtype=jnp.int32)

    fwd = jax.jit(textcnn_forward)
    out = jax.block_until_ready(fwd(tokens, kp))

    ref = reference_forward(tokens, params)
    assert out.shape == (B, CLASS_NUM), out.shape
    # bf16 MXU operands vs f32 reference -> loosened tolerance.
    assert bool(jnp.allclose(out, ref, rtol=2e-2, atol=2e-2)), (out, ref)
    # log-probs should sum to ~1 after exp
    assert bool(jnp.allclose(jnp.exp(out).sum(axis=1), 1.0, atol=1e-3))
    print("KERNEL_OK")
</pallas_src>

<mosaic_0001>
module attributes {stable_mosaic.version = 11 : i64} {
  func.func @kernel(%arg0: i32, %arg1: memref<64xi32, #tpu.memory_space<smem>>, %arg2: memref<8268x128xf32, #tpu.memory_space<any>>, %arg3: memref<128x1280xbf16, #tpu.memory_space<vmem>>, %arg4: memref<4x128xf32, #tpu.memory_space<vmem>>, %arg5: memref<512x128xbf16, #tpu.memory_space<vmem>>, %arg6: memref<4x128x128xbf16, #tpu.memory_space<vmem>>, %arg7: memref<5x128xf32, #tpu.memory_space<vmem>>, %arg8: memref<4x128xf32, #tpu.memory_space<vmem>>, %arg9: memref<64x128xf32, #tpu.memory_space<vmem>>, %arg10: memref<1x!tpu.dma_semaphore, #tpu.memory_space<semaphore_mem>>) attributes {dimension_semantics = [#tpu.dimension_semantics<arbitrary>], iteration_bounds = array<i64: 1>, scalar_prefetch = 1 : i64, scratch_operands = 2 : i64, tpu.core_type = #tpu.core_type<tc>, window_params = [{}, {pipeline_mode = #tpu.pipeline_mode<synchronous>, transform_indices = @transform_1, window_bounds = array<i64: 128, 1280>}, {pipeline_mode = #tpu.pipeline_mode<synchronous>, transform_indices = @transform_2, window_bounds = array<i64: 4, 128>}, {pipeline_mode = #tpu.pipeline_mode<synchronous>, transform_indices = @transform_3, window_bounds = array<i64: 512, 128>}, {pipeline_mode = #tpu.pipeline_mode<synchronous>, transform_indices = @transform_4, window_bounds = array<i64: 4, 128, 128>}, {pipeline_mode = #tpu.pipeline_mode<synchronous>, transform_indices = @transform_5, window_bounds = array<i64: 5, 128>}, {pipeline_mode = #tpu.pipeline_mode<synchronous>, transform_indices = @transform_6, window_bounds = array<i64: 4, 128>}]} {
    %c0_i32 = arith.constant 0 : i32
    %c32_i32 = arith.constant 32 : i32
    %0 = arith.addi %c0_i32, %c32_i32 : i32
    %c1_i32 = arith.constant 1 : i32
    scf.for %arg11 = %c0_i32 to %0 step %c1_i32  : i32 {
      %c1_i32_70 = arith.constant 1 : i32
      %166 = arith.muli %arg11, %c1_i32_70 : i32
      %c0_i32_71 = arith.constant 0 : i32
      %167 = arith.addi %c0_i32_71, %166 : i32
      %168 = arith.index_cast %167 : i32 to index
      %169 = memref.load %arg1[%168] : memref<64xi32, #tpu.memory_space<smem>>
      %c0_i32_72 = arith.constant 0 : i32
      %c0_i32_73 = arith.constant 0 : i32
      %170 = tpu.memref_slice %arg2[%169, %c0_i32_73] : memref<8268x128xf32, #tpu.memory_space<any>> -> memref<1x128xf32, #tpu.memory_space<any>>
      %171 = tpu.memref_squeeze %170 : memref<1x128xf32, #tpu.memory_space<any>> -> memref<128xf32, #tpu.memory_space<any>>
      %c0_i32_74 = arith.constant 0 : i32
      %172 = tpu.memref_slice %arg9[%167, %c0_i32_74] : memref<64x128xf32, #tpu.memory_space<vmem>> -> memref<1x128xf32, #tpu.memory_space<vmem>>
      %173 = tpu.memref_squeeze %172 : memref<1x128xf32, #tpu.memory_space<vmem>> -> memref<128xf32, #tpu.memory_space<vmem>>
      %174 = tpu.memref_slice %arg10[%c0_i32_72] : memref<1x!tpu.dma_semaphore, #tpu.memory_space<semaphore_mem>> -> memref<1x!tpu.dma_semaphore, #tpu.memory_space<semaphore_mem>>
      %175 = tpu.memref_squeeze %174 : memref<1x!tpu.dma_semaphore, #tpu.memory_space<semaphore_mem>> -> memref<!tpu.dma_semaphore, #tpu.memory_space<semaphore_mem>>
      tpu.enqueue_dma source(%171 : memref<128xf32, #tpu.memory_space<any>>) target(%173 : memref<128xf32, #tpu.memory_space<vmem>>) target_semaphore(%175 : memref<!tpu.dma_semaphore, #tpu.memory_space<semaphore_mem>>)
    }
    %c32_i32_0 = arith.constant 32 : i32
    %c0_i32_1 = arith.constant 0 : i32
    %c32_i32_2 = arith.constant 32 : i32
    %1 = arith.addi %c0_i32_1, %c32_i32_2 : i32
    %c1_i32_3 = arith.constant 1 : i32
    scf.for %arg11 = %c0_i32_1 to %1 step %c1_i32_3  : i32 {
      %c0_i32_70 = arith.constant 0 : i32
      %c0_i32_71 = arith.constant 0 : i32
      %c0_i32_72 = arith.constant 0 : i32
      %c0_i32_73 = arith.constant 0 : i32
      %166 = tpu.memref_slice %arg2[%c0_i32_70, %c0_i32_73] : memref<8268x128xf32, #tpu.memory_space<any>> -> memref<1x128xf32, #tpu.memory_space<any>>
      %167 = tpu.memref_squeeze %166 : memref<1x128xf32, #tpu.memory_space<any>> -> memref<128xf32, #tpu.memory_space<any>>
      %c0_i32_74 = arith.constant 0 : i32
      %168 = tpu.memref_slice %arg9[%c0_i32_71, %c0_i32_74] : memref<64x128xf32, #tpu.memory_space<vmem>> -> memref<1x128xf32, #tpu.memory_space<vmem>>
      %169 = tpu.memref_squeeze %168 : memref<1x128xf32, #tpu.memory_space<vmem>> -> memref<128xf32, #tpu.memory_space<vmem>>
      %170 = tpu.memref_slice %arg10[%c0_i32_72] : memref<1x!tpu.dma_semaphore, #tpu.memory_space<semaphore_mem>> -> memref<1x!tpu.dma_semaphore, #tpu.memory_space<semaphore_mem>>
      %171 = tpu.memref_squeeze %170 : memref<1x!tpu.dma_semaphore, #tpu.memory_space<semaphore_mem>> -> memref<!tpu.dma_semaphore, #tpu.memory_space<semaphore_mem>>
      tpu.wait_dma2 semaphore(%171 : memref<!tpu.dma_semaphore, #tpu.memory_space<semaphore_mem>>) src(%167 : memref<128xf32, #tpu.memory_space<any>>) dst(%169 : memref<128xf32, #tpu.memory_space<vmem>>)
    }
    %c0_i32_4 = arith.constant 0 : i32
    %c32_i32_5 = arith.constant 32 : i32
    %2 = arith.addi %c0_i32_4, %c32_i32_5 : i32
    %c1_i32_6 = arith.constant 1 : i32
    scf.for %arg11 = %c0_i32_4 to %2 step %c1_i32_6  : i32 {
      %c1_i32_70 = arith.constant 1 : i32
      %166 = arith.muli %arg11, %c1_i32_70 : i32
      %c32_i32_71 = arith.constant 32 : i32
      %167 = arith.addi %c32_i32_71, %166 : i32
      %168 = arith.index_cast %167 : i32 to index
      %169 = memref.load %arg1[%168] : memref<64xi32, #tpu.memory_space<smem>>
      %c0_i32_72 = arith.constant 0 : i32
      %c0_i32_73 = arith.constant 0 : i32
      %170 = tpu.memref_slice %arg2[%169, %c0_i32_73] : memref<8268x128xf32, #tpu.memory_space<any>> -> memref<1x128xf32, #tpu.memory_space<any>>
      %171 = tpu.memref_squeeze %170 : memref<1x128xf32, #tpu.memory_space<any>> -> memref<128xf32, #tpu.memory_space<any>>
      %c0_i32_74 = arith.constant 0 : i32
      %172 = tpu.memref_slice %arg9[%167, %c0_i32_74] : memref<64x128xf32, #tpu.memory_space<vmem>> -> memref<1x128xf32, #tpu.memory_space<vmem>>
      %173 = tpu.memref_squeeze %172 : memref<1x128xf32, #tpu.memory_space<vmem>> -> memref<128xf32, #tpu.memory_space<vmem>>
      %174 = tpu.memref_slice %arg10[%c0_i32_72] : memref<1x!tpu.dma_semaphore, #tpu.memory_space<semaphore_mem>> -> memref<1x!tpu.dma_semaphore, #tpu.memory_space<semaphore_mem>>
      %175 = tpu.memref_squeeze %174 : memref<1x!tpu.dma_semaphore, #tpu.memory_space<semaphore_mem>> -> memref<!tpu.dma_semaphore, #tpu.memory_space<semaphore_mem>>
      tpu.enqueue_dma source(%171 : memref<128xf32, #tpu.memory_space<any>>) target(%173 : memref<128xf32, #tpu.memory_space<vmem>>) target_semaphore(%175 : memref<!tpu.dma_semaphore, #tpu.memory_space<semaphore_mem>>)
    }
    %c32_i32_7 = arith.constant 32 : i32
    %c0_i32_8 = arith.constant 0 : i32
    %c32_i32_9 = arith.constant 32 : i32
    %3 = arith.addi %c0_i32_8, %c32_i32_9 : i32
    %c1_i32_10 = arith.constant 1 : i32
    scf.for %arg11 = %c0_i32_8 to %3 step %c1_i32_10  : i32 {
      %c0_i32_70 = arith.constant 0 : i32
      %c0_i32_71 = arith.constant 0 : i32
      %c0_i32_72 = arith.constant 0 : i32
      %c0_i32_73 = arith.constant 0 : i32
      %166 = tpu.memref_slice %arg2[%c0_i32_70, %c0_i32_73] : memref<8268x128xf32, #tpu.memory_space<any>> -> memref<1x128xf32, #tpu.memory_space<any>>
      %167 = tpu.memref_squeeze %166 : memref<1x128xf32, #tpu.memory_space<any>> -> memref<128xf32, #tpu.memory_space<any>>
      %c0_i32_74 = arith.constant 0 : i32
      %168 = tpu.memref_slice %arg9[%c0_i32_71, %c0_i32_74] : memref<64x128xf32, #tpu.memory_space<vmem>> -> memref<1x128xf32, #tpu.memory_space<vmem>>
      %169 = tpu.memref_squeeze %168 : memref<1x128xf32, #tpu.memory_space<vmem>> -> memref<128xf32, #tpu.memory_space<vmem>>
      %170 = tpu.memref_slice %arg10[%c0_i32_72] : memref<1x!tpu.dma_semaphore, #tpu.memory_space<semaphore_mem>> -> memref<1x!tpu.dma_semaphore, #tpu.memory_space<semaphore_mem>>
      %171 = tpu.memref_squeeze %170 : memref<1x!tpu.dma_semaphore, #tpu.memory_space<semaphore_mem>> -> memref<!tpu.dma_semaphore, #tpu.memory_space<semaphore_mem>>
      tpu.wait_dma2 semaphore(%171 : memref<!tpu.dma_semaphore, #tpu.memory_space<semaphore_mem>>) src(%167 : memref<128xf32, #tpu.memory_space<any>>) dst(%169 : memref<128xf32, #tpu.memory_space<vmem>>)
    }
    %c0 = arith.constant 0 : index
    %c0_11 = arith.constant 0 : index
    %4 = vector.load %arg9[%c0, %c0_11] : memref<64x128xf32, #tpu.memory_space<vmem>>, vector<64x128xf32>
    %5 = arith.truncf %4 : vector<64x128xf32> to vector<64x128xbf16>
    %c0_12 = arith.constant 0 : index
    %c0_13 = arith.constant 0 : index
    %6 = vector.load %arg4[%c0_12, %c0_13] : memref<4x128xf32, #tpu.memory_space<vmem>>, vector<4x128xf32>
    %7 = tpu.iota {dimensions = array<i32: 0>} : vector<64x1xi32>
    %c16_i32 = arith.constant 16 : i32
    %c0_i32_14 = arith.constant 0 : i32
    %8 = arith.cmpi eq, %c16_i32, %c0_i32_14 : i32
    %c1_i32_15 = arith.constant 1 : i32
    %9 = arith.select %8, %c1_i32_15, %c16_i32 : i32
    %10 = vector.broadcast %9 : i32 to vector<64x1xi32>
    %11 = arith.remsi %7, %10 : vector<64x1xi32>
    %c0_i32_16 = arith.constant 0 : i32
    %12 = vector.broadcast %c0_i32_16 : i32 to vector<64x1xi32>
    %13 = arith.cmpi ne, %11, %12 : vector<64x1xi32>
    %c0_i32_17 = arith.constant 0 : i32
    %14 = vector.broadcast %c0_i32_17 : i32 to vector<64x1xi32>
    %15 = arith.cmpi slt, %11, %14 : vector<64x1xi32>
    %c0_i32_18 = arith.constant 0 : i32
    %16 = arith.cmpi slt, %9, %c0_i32_18 : i32
    %17 = vector.broadcast %16 : i1 to vector<64x1xi1>
    %18 = vector.broadcast %17 : vector<64x1xi1> to vector<64x1xi1>
    %19 = arith.xori %15, %18 : vector<64x1xi1>
    %20 = arith.andi %19, %13 : vector<64x1xi1>
    %21 = vector.broadcast %9 : i32 to vector<64x1xi32>
    %22 = arith.addi %11, %21 : vector<64x1xi32>
    %23 = arith.select %20, %22, %11 : vector<64x1xi1>, vector<64x1xi32>
    %c0_19 = arith.constant 0 : index
    %c0_20 = arith.constant 0 : index
    %24 = vector.load %arg3[%c0_19, %c0_20] : memref<128x1280xbf16, #tpu.memory_space<vmem>>, vector<128x128xbf16>
    %cst = arith.constant dense<0.000000e+00> : vector<64x128xf32>
    %25 = tpu.matmul %5, %24, %cst {dimension_numbers = #tpu.dot_dimension_numbers<[1], [0], [0], [1], [0, 0, 1, 1], [], []>} : vector<64x128xbf16>, vector<128x128xbf16>, vector<64x128xf32> -> vector<64x128xf32>
    %26 = vector.extract_strided_slice %6 {offsets = [0, 0], sizes = [1, 128], strides = [1, 1]} : vector<4x128xf32> to vector<1x128xf32>
    %27 = vector.broadcast %26 : vector<1x128xf32> to vector<64x128xf32>
    %28 = arith.addf %25, %27 : vector<64x128xf32>
    %cst_21 = arith.constant 0.000000e+00 : f32
    %29 = vector.broadcast %cst_21 : f32 to vector<64x128xf32>
    %30 = arith.maximumf %28, %29 : vector<64x128xf32>
    %c16_i32_22 = arith.constant 16 : i32
    %31 = vector.broadcast %c16_i32_22 : i32 to vector<64x1xi32>
    %32 = arith.cmpi slt, %23, %31 : vector<64x1xi32>
    %cst_23 = arith.constant 0.000000e+00 : f32
    %33 = vector.shape_cast %32 : vector<64x1xi1> to vector<64x1xi1>
    %34 = vector.broadcast %33 : vector<64x1xi1> to vector<64x128xi1>
    %35 = vector.broadcast %cst_23 : f32 to vector<64x128xf32>
    %36 = arith.select %34, %30, %35 : vector<64x128xi1>, vector<64x128xf32>
    %37 = vector.shape_cast %36 : vector<64x128xf32> to vector<4x16x128xf32>
    %cst_24 = arith.constant dense<0xFF800000> : vector<4x128xf32>
    %38 = vector.multi_reduction <maximumf>, %37, %cst_24 [1] : vector<4x16x128xf32> to vector<4x128xf32>
    %c0_25 = arith.constant 0 : index
    %c128 = arith.constant 128 : index
    %39 = vector.load %arg3[%c0_25, %c128] : memref<128x1280xbf16, #tpu.memory_space<vmem>>, vector<128x256xbf16>
    %cst_26 = arith.constant dense<0.000000e+00> : vector<64x256xf32>
    %40 = tpu.matmul %5, %39, %cst_26 {dimension_numbers = #tpu.dot_dimension_numbers<[1], [0], [0], [1], [0, 0, 1, 1], [], []>} : vector<64x128xbf16>, vector<128x256xbf16>, vector<64x256xf32> -> vector<64x256xf32>
    %41 = vector.extract_strided_slice %40 {offsets = [0, 0], sizes = [64, 128], strides = [1, 1]} : vector<64x256xf32> to vector<64x128xf32>
    %42 = vector.extract_strided_slice %40 {offsets = [0, 128], sizes = [64, 128], strides = [1, 1]} : vector<64x256xf32> to vector<64x128xf32>
    %c63_i32 = arith.constant 63 : i32
    %43 = tpu.dynamic_rotate %42 by %c63_i32 dim 0 : vector<64x128xf32>, i32 -> vector<64x128xf32>
    %44 = arith.addf %41, %43 : vector<64x128xf32>
    %45 = vector.extract_strided_slice %6 {offsets = [1, 0], sizes = [1, 128], strides = [1, 1]} : vector<4x128xf32> to vector<1x128xf32>
    %46 = vector.broadcast %45 : vector<1x128xf32> to vector<64x128xf32>
    %47 = arith.addf %44, %46 : vector<64x128xf32>
    %cst_27 = arith.constant 0.000000e+00 : f32
    %48 = vector.broadcast %cst_27 : f32 to vector<64x128xf32>
    %49 = arith.maximumf %47, %48 : vector<64x128xf32>
    %c15_i32 = arith.constant 15 : i32
    %50 = vector.broadcast %c15_i32 : i32 to vector<64x1xi32>
    %51 = arith.cmpi slt, %23, %50 : vector<64x1xi32>
    %cst_28 = arith.constant 0.000000e+00 : f32
    %52 = vector.shape_cast %51 : vector<64x1xi1> to vector<64x1xi1>
    %53 = vector.broadcast %52 : vector<64x1xi1> to vector<64x128xi1>
    %54 = vector.broadcast %cst_28 : f32 to vector<64x128xf32>
    %55 = arith.select %53, %49, %54 : vector<64x128xi1>, vector<64x128xf32>
    %56 = vector.shape_cast %55 : vector<64x128xf32> to vector<4x16x128xf32>
    %cst_29 = arith.constant dense<0xFF800000> : vector<4x128xf32>
    %57 = vector.multi_reduction <maximumf>, %56, %cst_29 [1] : vector<4x16x128xf32> to vector<4x128xf32>
    %c0_30 = arith.constant 0 : index
    %c384 = arith.constant 384 : index
    %58 = vector.load %arg3[%c0_30, %c384] : memref<128x1280xbf16, #tpu.memory_space<vmem>>, vector<128x384xbf16>
    %cst_31 = arith.constant dense<0.000000e+00> : vector<64x384xf32>
    %59 = tpu.matmul %5, %58, %cst_31 {dimension_numbers = #tpu.dot_dimension_numbers<[1], [0], [0], [1], [0, 0, 1, 1], [], []>} : vector<64x128xbf16>, vector<128x384xbf16>, vector<64x384xf32> -> vector<64x384xf32>
    %60 = vector.extract_strided_slice %59 {offsets = [0, 0], sizes = [64, 128], strides = [1, 1]} : vector<64x384xf32> to vector<64x128xf32>
    %61 = vector.extract_strided_slice %59 {offsets = [0, 128], sizes = [64, 128], strides = [1, 1]} : vector<64x384xf32> to vector<64x128xf32>
    %c63_i32_32 = arith.constant 63 : i32
    %62 = tpu.dynamic_rotate %61 by %c63_i32_32 dim 0 : vector<64x128xf32>, i32 -> vector<64x128xf32>
    %63 = arith.addf %60, %62 : vector<64x128xf32>
    %64 = vector.extract_strided_slice %59 {offsets = [0, 256], sizes = [64, 128], strides = [1, 1]} : vector<64x384xf32> to vector<64x128xf32>
    %c62_i32 = arith.constant 62 : i32
    %65 = tpu.dynamic_rotate %64 by %c62_i32 dim 0 : vector<64x128xf32>, i32 -> vector<64x128xf32>
    %66 = arith.addf %63, %65 : vector<64x128xf32>
    %67 = vector.extract_strided_slice %6 {offsets = [2, 0], sizes = [1, 128], strides = [1, 1]} : vector<4x128xf32> to vector<1x128xf32>
    %68 = vector.broadcast %67 : vector<1x128xf32> to vector<64x128xf32>
    %69 = arith.addf %66, %68 : vector<64x128xf32>
    %cst_33 = arith.constant 0.000000e+00 : f32
    %70 = vector.broadcast %cst_33 : f32 to vector<64x128xf32>
    %71 = arith.maximumf %69, %70 : vector<64x128xf32>
    %c14_i32 = arith.constant 14 : i32
    %72 = vector.broadcast %c14_i32 : i32 to vector<64x1xi32>
    %73 = arith.cmpi slt, %23, %72 : vector<64x1xi32>
    %cst_34 = arith.constant 0.000000e+00 : f32
    %74 = vector.shape_cast %73 : vector<64x1xi1> to vector<64x1xi1>
    %75 = vector.broadcast %74 : vector<64x1xi1> to vector<64x128xi1>
    %76 = vector.broadcast %cst_34 : f32 to vector<64x128xf32>
    %77 = arith.select %75, %71, %76 : vector<64x128xi1>, vector<64x128xf32>
    %78 = vector.shape_cast %77 : vector<64x128xf32> to vector<4x16x128xf32>
    %cst_35 = arith.constant dense<0xFF800000> : vector<4x128xf32>
    %79 = vector.multi_reduction <maximumf>, %78, %cst_35 [1] : vector<4x16x128xf32> to vector<4x128xf32>
    %c0_36 = arith.constant 0 : index
    %c768 = arith.constant 768 : index
    %80 = vector.load %arg3[%c0_36, %c768] : memref<128x1280xbf16, #tpu.memory_space<vmem>>, vector<128x512xbf16>
    %cst_37 = arith.constant dense<0.000000e+00> : vector<64x512xf32>
    %81 = tpu.matmul %5, %80, %cst_37 {dimension_numbers = #tpu.dot_dimension_numbers<[1], [0], [0], [1], [0, 0, 1, 1], [], []>} : vector<64x128xbf16>, vector<128x512xbf16>, vector<64x512xf32> -> vector<64x512xf32>
    %82 = vector.extract_strided_slice %81 {offsets = [0, 0], sizes = [64, 128], strides = [1, 1]} : vector<64x512xf32> to vector<64x128xf32>
    %83 = vector.extract_strided_slice %81 {offsets = [0, 128], sizes = [64, 128], strides = [1, 1]} : vector<64x512xf32> to vector<64x128xf32>
    %c63_i32_38 = arith.constant 63 : i32
    %84 = tpu.dynamic_rotate %83 by %c63_i32_38 dim 0 : vector<64x128xf32>, i32 -> vector<64x128xf32>
    %85 = arith.addf %82, %84 : vector<64x128xf32>
    %86 = vector.extract_strided_slice %81 {offsets = [0, 256], sizes = [64, 128], strides = [1, 1]} : vector<64x512xf32> to vector<64x128xf32>
    %c62_i32_39 = arith.constant 62 : i32
    %87 = tpu.dynamic_rotate %86 by %c62_i32_39 dim 0 : vector<64x128xf32>, i32 -> vector<64x128xf32>
    %88 = arith.addf %85, %87 : vector<64x128xf32>
    %89 = vector.extract_strided_slice %81 {offsets = [0, 384], sizes = [64, 128], strides = [1, 1]} : vector<64x512xf32> to vector<64x128xf32>
    %c61_i32 = arith.constant 61 : i32
    %90 = tpu.dynamic_rotate %89 by %c61_i32 dim 0 : vector<64x128xf32>, i32 -> vector<64x128xf32>
    %91 = arith.addf %88, %90 : vector<64x128xf32>
    %92 = vector.extract_strided_slice %6 {offsets = [3, 0], sizes = [1, 128], strides = [1, 1]} : vector<4x128xf32> to vector<1x128xf32>
    %93 = vector.broadcast %92 : vector<1x128xf32> to vector<64x128xf32>
    %94 = arith.addf %91, %93 : vector<64x128xf32>
    %cst_40 = arith.constant 0.000000e+00 : f32
    %95 = vector.broadcast %cst_40 : f32 to vector<64x128xf32>
    %96 = arith.maximumf %94, %95 : vector<64x128xf32>
    %c13_i32 = arith.constant 13 : i32
    %97 = vector.broadcast %c13_i32 : i32 to vector<64x1xi32>
    %98 = arith.cmpi slt, %23, %97 : vector<64x1xi32>
    %cst_41 = arith.constant 0.000000e+00 : f32
    %99 = vector.shape_cast %98 : vector<64x1xi1> to vector<64x1xi1>
    %100 = vector.broadcast %99 : vector<64x1xi1> to vector<64x128xi1>
    %101 = vector.broadcast %cst_41 : f32 to vector<64x128xf32>
    %102 = arith.select %100, %96, %101 : vector<64x128xi1>, vector<64x128xf32>
    %103 = vector.shape_cast %102 : vector<64x128xf32> to vector<4x16x128xf32>
    %cst_42 = arith.constant dense<0xFF800000> : vector<4x128xf32>
    %104 = vector.multi_reduction <maximumf>, %103, %cst_42 [1] : vector<4x16x128xf32> to vector<4x128xf32>
    %105 = tpu.concatenate %38, %57, %79, %104 in 1 : vector<4x128xf32>, vector<4x128xf32>, vector<4x128xf32>, vector<4x128xf32> -> vector<4x512xf32>
    %106 = arith.truncf %105 : vector<4x512xf32> to vector<4x512xbf16>
    %c0_43 = arith.constant 0 : index
    %c0_44 = arith.constant 0 : index
    %107 = vector.load %arg7[%c0_43, %c0_44] : memref<5x128xf32, #tpu.memory_space<vmem>>, vector<5x128xf32>
    %c0_45 = arith.constant 0 : index
    %c0_46 = arith.constant 0 : index
    %108 = vector.load %arg5[%c0_45, %c0_46] : memref<512x128xbf16, #tpu.memory_space<vmem>>, vector<512x128xbf16>
    %cst_47 = arith.constant dense<0.000000e+00> : vector<4x128xf32>
    %109 = tpu.matmul %106, %108, %cst_47 {dimension_numbers = #tpu.dot_dimension_numbers<[1], [0], [0], [1], [0, 0, 1, 1], [], []>} : vector<4x512xbf16>, vector<512x128xbf16>, vector<4x128xf32> -> vector<4x128xf32>
    %110 = vector.extract_strided_slice %107 {offsets = [0, 0], sizes = [1, 128], strides = [1, 1]} : vector<5x128xf32> to vector<1x128xf32>
    %111 = vector.broadcast %110 : vector<1x128xf32> to vector<4x128xf32>
    %112 = arith.addf %109, %111 : vector<4x128xf32>
    %cst_48 = arith.constant 0.000000e+00 : f32
    %113 = vector.broadcast %cst_48 : f32 to vector<4x128xf32>
    %114 = arith.maximumf %112, %113 : vector<4x128xf32>
    %115 = arith.truncf %114 : vector<4x128xf32> to vector<4x128xbf16>
    %c0_49 = arith.constant 0 : index
    %c0_50 = arith.constant 0 : index
    %c0_51 = arith.constant 0 : index
    %116 = vector.load %arg6[%c0_49, %c0_50, %c0_51] : memref<4x128x128xbf16, #tpu.memory_space<vmem>>, vector<1x128x128xbf16>
    %117 = vector.shape_cast %116 : vector<1x128x128xbf16> to vector<128x128xbf16>
    %cst_52 = arith.constant dense<0.000000e+00> : vector<4x128xf32>
    %118 = tpu.matmul %115, %117, %cst_52 {dimension_numbers = #tpu.dot_dimension_numbers<[1], [0], [0], [1], [0, 0, 1, 1], [], []>} : vector<4x128xbf16>, vector<128x128xbf16>, vector<4x128xf32> -> vector<4x128xf32>
    %119 = vector.extract_strided_slice %107 {offsets = [1, 0], sizes = [1, 128], strides = [1, 1]} : vector<5x128xf32> to vector<1x128xf32>
    %120 = vector.broadcast %119 : vector<1x128xf32> to vector<4x128xf32>
    %121 = arith.addf %118, %120 : vector<4x128xf32>
    %cst_53 = arith.constant 0.000000e+00 : f32
    %122 = vector.broadcast %cst_53 : f32 to vector<4x128xf32>
    %123 = arith.maximumf %121, %122 : vector<4x128xf32>
    %124 = arith.truncf %123 : vector<4x128xf32> to vector<4x128xbf16>
    %c1 = arith.constant 1 : index
    %c0_54 = arith.constant 0 : index
    %c0_55 = arith.constant 0 : index
    %125 = vector.load %arg6[%c1, %c0_54, %c0_55] : memref<4x128x128xbf16, #tpu.memory_space<vmem>>, vector<1x128x128xbf16>
    %126 = vector.shape_cast %125 : vector<1x128x128xbf16> to vector<128x128xbf16>
    %cst_56 = arith.constant dense<0.000000e+00> : vector<4x128xf32>
    %127 = tpu.matmul %124, %126, %cst_56 {dimension_numbers = #tpu.dot_dimension_numbers<[1], [0], [0], [1], [0, 0, 1, 1], [], []>} : vector<4x128xbf16>, vector<128x128xbf16>, vector<4x128xf32> -> vector<4x128xf32>
    %128 = vector.extract_strided_slice %107 {offsets = [2, 0], sizes = [1, 128], strides = [1, 1]} : vector<5x128xf32> to vector<1x128xf32>
    %129 = vector.broadcast %128 : vector<1x128xf32> to vector<4x128xf32>
    %130 = arith.addf %127, %129 : vector<4x128xf32>
    %cst_57 = arith.constant 0.000000e+00 : f32
    %131 = vector.broadcast %cst_57 : f32 to vector<4x128xf32>
    %132 = arith.maximumf %130, %131 : vector<4x128xf32>
    %133 = arith.truncf %132 : vector<4x128xf32> to vector<4x128xbf16>
    %c2 = arith.constant 2 : index
    %c0_58 = arith.constant 0 : index
    %c0_59 = arith.constant 0 : index
    %134 = vector.load %arg6[%c2, %c0_58, %c0_59] : memref<4x128x128xbf16, #tpu.memory_space<vmem>>, vector<1x128x128xbf16>
    %135 = vector.shape_cast %134 : vector<1x128x128xbf16> to vector<128x128xbf16>
    %cst_60 = arith.constant dense<0.000000e+00> : vector<4x128xf32>
    %136 = tpu.matmul %133, %135, %cst_60 {dimension_numbers = #tpu.dot_dimension_numbers<[1], [0], [0], [1], [0, 0, 1, 1], [], []>} : vector<4x128xbf16>, vector<128x128xbf16>, vector<4x128xf32> -> vector<4x128xf32>
    %137 = vector.extract_strided_slice %107 {offsets = [3, 0], sizes = [1, 128], strides = [1, 1]} : vector<5x128xf32> to vector<1x128xf32>
    %138 = vector.broadcast %137 : vector<1x128xf32> to vector<4x128xf32>
    %139 = arith.addf %136, %138 : vector<4x128xf32>
    %cst_61 = arith.constant 0.000000e+00 : f32
    %140 = vector.broadcast %cst_61 : f32 to vector<4x128xf32>
    %141 = arith.maximumf %139, %140 : vector<4x128xf32>
    %142 = arith.truncf %141 : vector<4x128xf32> to vector<4x128xbf16>
    %c3 = arith.constant 3 : index
    %c0_62 = arith.constant 0 : index
    %c0_63 = arith.constant 0 : index
    %143 = vector.load %arg6[%c3, %c0_62, %c0_63] : memref<4x128x128xbf16, #tpu.memory_space<vmem>>, vector<1x128x128xbf16>
    %144 = vector.shape_cast %143 : vector<1x128x128xbf16> to vector<128x128xbf16>
    %cst_64 = arith.constant dense<0.000000e+00> : vector<4x128xf32>
    %145 = tpu.matmul %142, %144, %cst_64 {dimension_numbers = #tpu.dot_dimension_numbers<[1], [0], [0], [1], [0, 0, 1, 1], [], []>} : vector<4x128xbf16>, vector<128x128xbf16>, vector<4x128xf32> -> vector<4x128xf32>
    %146 = vector.extract_strided_slice %107 {offsets = [4, 0], sizes = [1, 128], strides = [1, 1]} : vector<5x128xf32> to vector<1x128xf32>
    %147 = vector.broadcast %146 : vector<1x128xf32> to vector<4x128xf32>
    %148 = arith.addf %145, %147 : vector<4x128xf32>
    %149 = tpu.iota {dimensions = array<i32: 1>} : vector<4x128xi32>
    %c4_i32 = arith.constant 4 : i32
    %150 = vector.broadcast %c4_i32 : i32 to vector<4x128xi32>
    %151 = arith.cmpi slt, %149, %150 : vector<4x128xi32>
    %cst_65 = arith.constant -1.000000e+30 : f32
    %152 = vector.broadcast %cst_65 : f32 to vector<4x128xf32>
    %153 = arith.select %151, %148, %152 : vector<4x128xi1>, vector<4x128xf32>
    %cst_66 = arith.constant dense<0xFF800000> : vector<4xf32>
    %154 = vector.multi_reduction <maximumf>, %153, %cst_66 [1] : vector<4x128xf32> to vector<4xf32>
    %155 = vector.shape_cast %154 : vector<4xf32> to vector<4x1xf32>
    %156 = vector.broadcast %155 : vector<4x1xf32> to vector<4x128xf32>
    %157 = arith.subf %153, %156 : vector<4x128xf32>
    %158 = math.exp %157 : vector<4x128xf32>
    %cst_67 = arith.constant dense<0.000000e+00> : vector<4xf32>
    %159 = vector.multi_reduction <add>, %158, %cst_67 [1] : vector<4x128xf32> to vector<4xf32>
    %160 = vector.shape_cast %159 : vector<4xf32> to vector<4x1xf32>
    %161 = math.log %160 : vector<4x1xf32>
    %162 = arith.addf %161, %155 : vector<4x1xf32>
    %163 = vector.broadcast %162 : vector<4x1xf32> to vector<4x128xf32>
    %164 = arith.subf %153, %163 : vector<4x128xf32>
    %c0_68 = arith.constant 0 : index
    %c0_69 = arith.constant 0 : index
    %165 = vector.load %arg8[%c0_68, %c0_69] : memref<4x128xf32, #tpu.memory_space<vmem>>, vector<4x128xf32>
    tpu.vector_store %arg8[%c0_68, %c0_69], %164 {strides = array<i32>} : memref<4x128xf32, #tpu.memory_space<vmem>>, vector<4x128xf32>,
    return
  }
  func.func @transform_1(%arg0: i32, %arg1: memref<64xi32, #tpu.memory_space<smem>>) -> (i32, i32) {
    %c0_i32 = arith.constant 0 : i32
    %c0_i32_0 = arith.constant 0 : i32
    %c0_i32_1 = arith.constant 0 : i32
    return %c0_i32, %c0_i32_0 : i32, i32
  }
  func.func @transform_2(%arg0: i32, %arg1: memref<64xi32, #tpu.memory_space<smem>>) -> (i32, i32) {
    %c0_i32 = arith.constant 0 : i32
    %c0_i32_0 = arith.constant 0 : i32
    %c0_i32_1 = arith.constant 0 : i32
    return %c0_i32, %c0_i32_0 : i32, i32
  }
  func.func @transform_3(%arg0: i32, %arg1: memref<64xi32, #tpu.memory_space<smem>>) -> (i32, i32) {
    %c0_i32 = arith.constant 0 : i32
    %c0_i32_0 = arith.constant 0 : i32
    %c0_i32_1 = arith.constant 0 : i32
    return %c0_i32, %c0_i32_0 : i32, i32
  }
  func.func @transform_4(%arg0: i32, %arg1: memref<64xi32, #tpu.memory_space<smem>>) -> (i32, i32, i32) {
    %c0_i32 = arith.constant 0 : i32
    %c0_i32_0 = arith.constant 0 : i32
    %c0_i32_1 = arith.constant 0 : i32
    %c0_i32_2 = arith.constant 0 : i32
    return %c0_i32, %c0_i32_0, %c0_i32_1 : i32, i32, i32
  }
  func.func @transform_5(%arg0: i32, %arg1: memref<64xi32, #tpu.memory_space<smem>>) -> (i32, i32) {
    %c0_i32 = arith.constant 0 : i32
    %c0_i32_0 = arith.constant 0 : i32
    %c0_i32_1 = arith.constant 0 : i32
    return %c0_i32, %c0_i32_0 : i32, i32
  }
  func.func @transform_6(%arg0: i32, %arg1: memref<64xi32, #tpu.memory_space<smem>>) -> (i32, i32) {
    %c0_i32 = arith.constant 0 : i32
    %c0_i32_0 = arith.constant 0 : i32
    %c0_i32_1 = arith.constant 0 : i32
    return %c0_i32, %c0_i32_0 : i32, i32
  }
}

</mosaic_0001>

<bundles_post_ra>
// kernel: textcnn_forward.1
= control target key start
LH: loop header
LB: loop body
LE: loop exit
PB: predicated region body
PF: predicated region fallthrough
CT: control target
= control target key end

     0   :  { %s3932_s0 = inlined_call_operand.vmem [shape: s32[64], index: 0, kind: input, shape index: {}]   ;;  %s3933_s1 = inlined_call_operand.hbm [shape: f32[8268,128], index: 1, kind: input, shape index: {}]   ;;  %s3934_s2 = inlined_call_operand.hbm [shape: bf16[128,1280], index: 2, kind: input, shape index: {}]   ;;  %s3935_s3 = inlined_call_operand.hbm [shape: f32[4,128], index: 3, kind: input, shape index: {}]   ;;  %s3936_s4 = inlined_call_operand.hbm [shape: bf16[512,128], index: 4, kind: input, shape index: {}]   ;;  %s3937_s5 = inlined_call_operand.hbm [shape: bf16[4,128,128], index: 5, kind: input, shape index: {}]   ;;  %s3938_s6 = inlined_call_operand.hbm [shape: f32[5,128], index: 6, kind: input, shape index: {}]   ;;  %s3939_s7 = inlined_call_operand.hbm [shape: f32[4,128], index: 7, kind: output, shape index: {}]  }
   0x1   :  { %s12_s26 = sshll.u32 %s3932_s0, 4  ;;  %s13_s26 = int_to_ptr.vmem [resolvable:$true] %s12_s26 }
   0x2   :  { %s3161_s27 = scalar_lea.vmem %s13_s26, 16  ;;  %p3166_p1 = scmp.lt.s32.totalorder %s13_s26, %s13_s26 }
   0x3   :  { %p3162_p0 = scmp.ne.s32.totalorder %s13_s26, %s3161_s27  ;;  %p3167_p2 = scmp.lt.s32.totalorder %s3161_s27, %s3161_s27 }
   0x5   :  { %p3168_p3 = por %p3167_p2, %p3166_p1 }
   0x7   :  { %p3169_p4 = pnand %p3168_p3, %p3162_p0 }
   0x9   :  { %3172 = shalt.err (!%p3169_p4)  }
   0xa   :  { %s3399_s28 = smov [#allocation5]  }
   0xb   :  { %15 = dma.vmem_to_smem %s13_s26, 16, %s3399_s28, [#allocation4] }
   0xc   :  { %3369 = dma.done.wait [#allocation4], 16 }
   0xd   :  { %3370 = vsyncadd [#allocation4], 4294967280 }
   0xe   :  { %17 = sfence }
   0xf   :  { %18 = vsyncpa [#allocation7], 0 }
  0x10   :  { %19 = vsyncpa [#allocation10], 0 }
  0x11   :  { %20 = vsyncpa [#allocation13], 0 }
  0x12   :  { %21 = vsyncpa [#allocation8], 0  ;;  %s3400_s29 = smov [#allocation9]   ;;  %s3173_s9 = scalar_lea.hbm %s3935_s3, 64 }
  0x13   :  { %s40_s30 = sshll.u32 %s3400_s29, 4  ;;  %p3174_p5 = scmp.ne.s32.totalorder %s3935_s3, %s3173_s9  ;;  %s41_s30 = int_to_ptr.vmem [resolvable:$true] %s40_s30 }
  0x14   :  { %p3177_p6 = scmp.lt.u32.totalorder %s3173_s9, %s3935_s3 }
  0x16   :  { %p3179_p7 = pnand %p3177_p6, %p3174_p5 }
  0x18   :  { %3182 = shalt.err (!%p3179_p7)
}
  0x19   :  { %s3183_s14 = scalar_lea.vmem %s41_s30, 64  ;;  %p3188_p9 = scmp.lt.s32.totalorder %s41_s30, %s41_s30 }
  0x1a   :  { %p3184_p8 = scmp.ne.s32.totalorder %s41_s30, %s3183_s14  ;;  %p3189_p10 = scmp.lt.s32.totalorder %s3183_s14, %s3183_s14 }
  0x1c   :  { %p3190_p11 = por %p3189_p10, %p3188_p9 }
  0x1e   :  { %p3191_p12 = pnand %p3190_p11, %p3184_p8 }
  0x20   :  { %3194 = shalt.err (!%p3191_p12)
}
  0x21   :  { %43 = dma.hbm_to_vmem [thread:$0]  %s3935_s3, 64, %s41_s30, [#allocation10]  }
  0x22   :  { %s3401_s17 = smov [#allocation12]   ;;  %s3402_s19 = smov [#allocation6]  }
  0x23   :  { %s61_s18 = sshll.u32 %s3401_s17, 4  ;;  %s27_s20 = sshll.u32 %s3402_s19, 4  ;;  %s62_s18 = int_to_ptr.vmem [resolvable:$true] %s61_s18  ;;  %s28_s20 = int_to_ptr.vmem [resolvable:$true] %s27_s20 }
  0x24   :  { %s3195_s23 = scalar_lea.hbm %s3937_s5, 4096 }
  0x25   :  { %p3196_p13 = scmp.ne.s32.totalorder %s3937_s5, %s3195_s23  ;;  %p3199_p0 = scmp.lt.u32.totalorder %s3195_s23, %s3937_s5 }
  0x27   :  { %p3201_p1 = pnand %p3199_p0, %p3196_p13 }
  0x29   :  { %3204 = shalt.err (!%p3201_p1)
}
  0x2a   :  { %s3205_s3 = scalar_lea.vmem %s62_s18, 4096  ;;  %p3210_p3 = scmp.lt.s32.totalorder %s62_s18, %s62_s18 }
  0x2b   :  { %p3206_p2 = scmp.ne.s32.totalorder %s62_s18, %s3205_s3  ;;  %p3211_p4 = scmp.lt.s32.totalorder %s3205_s3, %s3205_s3 }
  0x2d   :  { %p3212_p5 = por %p3211_p4, %p3210_p3 }
  0x2f   :  { %p3213_p6 = pnand %p3212_p5, %p3206_p2 }
  0x31   :  { %3216 = shalt.err (!%p3213_p6)
}
  0x32   :  { %s3403_s28 = smov 64   ;;  %s3404_s29 = smov 4  }
  0x33   :  { %67 = dma.hbm_to_vmem [thread:$0]  %s3937_s5, 4096, %s62_s18, [#allocation13], %s3403_s28, %s3403_s28, %s3404_s29  }
  0x34   :  { %s3217_s10 = scalar_lea.hbm %s3934_s2, 10240 }
  0x35   :  { %p3218_p7 = scmp.ne.s32.totalorder %s3934_s2, %s3217_s10  ;;  %p3221_p8 = scmp.lt.u32.totalorder %s3217_s10, %s3934_s2 }
  0x37   :  { %p3223_p9 = pnand %p3221_p8, %p3218_p7 }
  0x39   :  { %3226 = shalt.err (!%p3223_p9)
}
  0x3a   :  { %s3227_s15 = scalar_lea.vmem %s28_s20, 10240  ;;  %p3232_p11 = scmp.lt.s32.totalorder %s28_s20, %s28_s20 }
  0x3b   :  { %p3228_p10 = scmp.ne.s32.totalorder %s28_s20, %s3227_s15  ;;  %p3233_p12 = scmp.lt.s32.totalorder %s3227_s15, %s3227_s15 }
  0x3d   :  { %p3234_p13 = por %p3233_p12, %p3232_p11 }
  0x3f   :  { %p3235_p0 = pnand %p3234_p13, %p3228_p10 }
  0x41   :  { %3238 = shalt.err (!%p3235_p0)
}
  0x42   :  { %s3405_s5 = smov 640   ;;  %s3406_s16 = smov 40  }
  0x43   :  { %33 = dma.hbm_to_vmem [thread:$0]  %s3934_s2, 10240, %s28_s20, [#allocation7], %s3405_s5, %s3405_s5, %s3406_s16  }
  0x44   :  { %s3407_s19 = smov [#allocation11]   ;;  %s3408_s22 = smov [#allocation14]  }
  0x45   :  { %s49_s21 = sshll.u32 %s3407_s19, 4  ;;  %s74_s23 = sshll.u32 %s3408_s22, 4  ;;  %s50_s21 = int_to_ptr.vmem [resolvable:$true] %s49_s21  ;;  %s75_s23 = int_to_ptr.vmem [resolvable:$true] %s74_s23 }
  0x46   :  { %s3239_s26 = scalar_lea.hbm %s3936_s4, 4096 }
  0x47   :  { %p3240_p1 = scmp.ne.s32.totalorder %s3936_s4, %s3239_s26  ;;  %p3243_p2 = scmp.lt.u32.totalorder %s3239_s26, %s3936_s4 }
  0x49   :  { %p3245_p3 = pnand %p3243_p2, %p3240_p1 }
  0x4b   :  { %3248 = shalt.err (!%p3245_p3)
}
  0x4c   :  { %s3249_s2 = scalar_lea.vmem %s50_s21, 4096  ;;  %p3254_p5 = scmp.lt.s32.totalorder %s50_s21, %s50_s21 }
  0x4d   :  { %p3250_p4 = scmp.ne.s32.totalorder %s50_s21, %s3249_s2  ;;  %p3255_p6 = scmp.lt.s32.totalorder %s3249_s2, %s3249_s2 }
  0x4f   :  { %p3256_p7 = por %p3255_p6, %p3254_p5 }
  0x51   :  { %p3257_p8 = pnand %p3256_p7, %p3250_p4 }
  0x53   :  { %3260 = shalt.err (!%p3257_p8)
}
  0x54   :  { %55 = dma.hbm_to_vmem [thread:$0]  %s3936_s4, 4096, %s50_s21, [#allocation10], %s3403_s28, %s3403_s28, %s3404_s29  }
  0x55   :  { %s3261_s11 = scalar_lea.hbm %s3938_s6, 128 }
  0x56   :  { %p3262_p9 = scmp.ne.s32.totalorder %s3938_s6, %s3261_s11  ;;  %p3265_p10 = scmp.lt.u32.totalorder %s3261_s11, %s3938_s6 }
  0x58   :  { %p3267_p11 = pnand %p3265_p10, %p3262_p9 }
  0x5a   :  { %3270 = shalt.err (!%p3267_p11)
}
  0x5b   :  { %s3271_s5 = scalar_lea.vmem %s75_s23, 128  ;;  %p3276_p13 = scmp.lt.s32.totalorder %s75_s23, %s75_s23 }
  0x5c   :  { %p3272_p12 = scmp.ne.s32.totalorder %s75_s23, %s3271_s5  ;;  %p3277_p0 = scmp.lt.s32.totalorder %s3271_s5, %s3271_s5 }
  0x5e   :  { %p3278_p1 = por %p3277_p0, %p3276_p13 }
  0x60   :  { %p3279_p2 = pnand %p3278_p1, %p3272_p12 }
  0x62   :  { %3282 = shalt.err (!%p3279_p2)
}
  0x63   :  { %77 = dma.hbm_to_vmem [thread:$0]  %s3938_s6, 128, %s75_s23, [#allocation13]  }
  0x64   :  { %3371 = dma.done.wait [#allocation7], 10240  }
  0x65   :  { %3372 = vsyncadd [#allocation7], 4294957056 }
  0x66   :  { %3373 = dma.done.wait [#allocation10], 4160  }
  0x67   :  { %3374 = vsyncadd [#allocation10], 4294963136 }
  0x68   :  { %3375 = dma.done.wait [#allocation13], 4224  }
  0x69   :  { %3376 = vsyncadd [#allocation13], 4294963072  ;;  %s3523_s29 = smov 0  }
  0x6a LB: > { %s100_s16 = sld [smem:[#allocation5 + %s3385_s29]]  ;;  %s103_s17 = scalar_lea.vmem [#allocation2], %s3385_s29  ;;  %s3385_s29 = sphi %s3523_s29, %s99_s29  }
  0x6b   : > { %s111_s18 = sshll.u32 %s103_s17, 4  ;;  %s3285_s26 = scalar_lea.hbm %s3933_s1, 132352  ;;  %s112_s18 = int_to_ptr.vmem [resolvable:$true] %s111_s18 }
  0x70   : > { %s2556_s6 = sshll.u32 %s100_s16, 4 }
  0x71   : > { %s102_s22 = scalar_lea.hbm %s3933_s1, %s2556_s6 }
  0x72   : > { %s3283_s23 = scalar_lea.hbm %s102_s22, 16  ;;  %p3286_p4 = scmp.lt.u32.totalorder %s102_s22, %s3933_s1 }
  0x73   : > { %p3284_p3 = scmp.ne.s32.totalorder %s102_s22, %s3283_s23  ;;  %p3287_p5 = scmp.lt.u32.totalorder %s3285_s26, %s3283_s23 }
  0x74   : > { %p3289_p7 = scmp.lt.u32.totalorder %s3283_s23, %s102_s22 }
  0x75   : > { %p3288_p6 = por %p3287_p5, %p3286_p4 }
  0x77   : > { %p3290_p8 = por %p3289_p7, %p3288_p6 }
  0x79   : > { %p3291_p9 = pnand %p3290_p8, %p3284_p3 }
  0x7b   : > { %3294 = shalt.err (!%p3291_p9)  }
  0x7c   : > { %s3295_s2 = scalar_lea.vmem %s112_s18, 16  ;;  %s3409_s20 = smov [#allocation2]  }
  0x7d   : > { %p3296_p10 = scmp.ne.s32.totalorder %s112_s18, %s3295_s2  ;;  %s3297_s8 = sshll.u32 %s3409_s20, 4  ;;  %s3543_s8 = int_to_ptr.vmem [resolvable:$false] %s3297_s8 }
  0x7e   : > { %s3299_s9 = scalar_lea.vmem %s3543_s8, 1024  ;;  %p3300_p11 = scmp.lt.s32.totalorder %s112_s18, %s3543_s8 }
  0x7f   : > { %p3301_p12 = scmp.lt.s32.totalorder %s3299_s9, %s3295_s2 }
  0x81   : > { %p3302_p13 = por %p3301_p12, %p3300_p11 }
  0x83   : > { %p3303_p0 = pnand %p3302_p13, %p3296_p10 }
  0x85   : > { %3306 = shalt.err (!%p3303_p0)  }
  0x86   : > { %114 = dma.hbm_to_vmem [thread:$0]  %s102_s22, 16, %s112_s18, [#allocation3] }
  0x87   : > { %s99_s29 = sadd.s32 1, %s3385_s29  }
  0x88   : > { %p96_p1 = scmp.ge.s32.totalorder %s99_s29, 32  }
  0x89   :  { %s3387_s10 = smov (%p96_p1), 0  }
  0x8a   :  { %98 = sbr.rel (!%p96_p1) target bundleno = 106 (0x6a), region = 103 }
  0x91 LB: > { %3377 = dma.done.wait [#allocation3], 16  ;;  %s3389_s10 = sphi %s3387_s10, %s120_s10  }
  0x92   : > { %3378 = vsyncadd [#allocation3], 4294967280  ;;  %s120_s10 = sadd.s32 1, %s3389_s10  }
  0x93   : > { %p117_p2 = scmp.ge.s32.totalorder %s120_s10, 32  }
  0x94   :  { %s3552_s11 = smov (%p117_p2), 0  }
  0x95   :  { %119 = sbr.rel (!%p117_p2) target bundleno = 145 (0x91), region = 114 }
  0x9c LB: > { %s129_s12 = sadd.s32 32, %s3393_s11  ;;  %s2534_s14 = scalar_lea.vmem [#allocation2], %s3393_s11  ;;  %s3393_s11 = sphi %s3552_s11, %s128_s11  }
  0x9d   : > { %s130_s13 = sld [smem:[#allocation5 + %s129_s12]]  ;;  %s2535_s15 = scalar_lea.vmem %s2534_s14, 32 [#allocation2] }
  0x9e   : > { %s141_s5 = sshll.u32 %s2535_s15, 4  ;;  %s142_s5 = int_to_ptr.vmem [resolvable:$true] %s141_s5 }
  0xa3   : > { %s2557_s4 = sshll.u32 %s130_s13, 4 }
  0xa4   : > { %s132_s16 = scalar_lea.hbm %s3933_s1, %s2557_s4 }
  0xa5   : > { %s3307_s17 = scalar_lea.hbm %s132_s16, 16  ;;  %p3310_p4 = scmp.lt.u32.totalorder %s132_s16, %s3933_s1 }
  0xa6   : > { %p3308_p3 = scmp.ne.s32.totalorder %s132_s16, %s3307_s17  ;;  %p3311_p5 = scmp.lt.u32.totalorder %s3285_s26, %s3307_s17 }
  0xa7   : > { %p3313_p7 = scmp.lt.u32.totalorder %s3307_s17, %s132_s16 }
  0xa8   : > { %p3312_p6 = por %p3311_p5, %p3310_p4 }
  0xaa   : > { %p3314_p8 = por %p3313_p7, %p3312_p6 }
  0xac   : > { %p3315_p9 = pnand %p3314_p8, %p3308_p3 }
  0xae   : > { %3318 = shalt.err (!%p3315_p9)  }
  0xaf   : > { %s3319_s22 = scalar_lea.vmem %s142_s5, 16  ;;  %p3324_p11 = scmp.lt.s32.totalorder %s142_s5, %s3543_s8 }
  0xb0   : > { %p3320_p10 = scmp.ne.s32.totalorder %s142_s5, %s3319_s22  ;;  %p3325_p12 = scmp.lt.s32.totalorder %s3299_s9, %s3319_s22 }
  0xb2   : > { %p3326_p13 = por %p3325_p12, %p3324_p11 }
  0xb4   : > { %p3327_p0 = pnand %p3326_p13, %p3320_p10 }
  0xb6   : > { %3330 = shalt.err (!%p3327_p0)  }
  0xb7   : > { %144 = dma.hbm_to_vmem [thread:$0]  %s132_s16, 16, %s142_s5, [#allocation3] }
  0xb8   : > { %s128_s11 = sadd.s32 1, %s3393_s11  }
  0xb9   : > { %p125_p1 = scmp.ge.s32.totalorder %s128_s11, 32  }
  0xba   :  { %s3395_s23 = smov (%p125_p1), 0  }
  0xbb   :  { %127 = sbr.rel (!%p125_p1) target bundleno = 156 (0x9c), region = 125 }
  0xc2 LB: > { %3379 = dma.done.wait [#allocation3], 16  ;;  %s3397_s23 = sphi %s3395_s23, %s150_s23  }
  0xc3   : > { %3380 = vsyncadd [#allocation3], 4294967280  ;;  %s150_s23 = sadd.s32 1, %s3397_s23  }
  0xc4   : > { %p147_p2 = scmp.ge.s32.totalorder %s150_s23, 32  }
  0xc5   :  { %v2981_v0 = vld [vmem:[#allocation6] ss:$40 sps:$4 sm:$0xff] (%p147_p2)   ;;  %v2984_v2 = vld [vmem:[#allocation6 + $0x4] ss:$40 sps:$4 sm:$0xff] (%p147_p2)   ;;  %v3410_v3 = vmov (%p147_p2), 0   ;;  %v155_v28 = vld [vmem:[#allocation2 + $0x10] sm:$0xff] (%p147_p2) }
  0xc6   :  { %149 = sbr.rel (!%p147_p2) target bundleno = 194 (0xc2), region = 136  ;;  %v2982_v1 = vld [vmem:[#allocation6 + $0x8] ss:$40 sps:$4 sm:$0xff] (%p147_p2)   ;;  %2807 = vmatprep.subr.bf16.mxu0 (%p147_p2), %v2981_v0  ;;  %600 = vmatprep.mubr.bf16.mxu1 (%p147_p2), %v3410_v3  ;;  %v2986_v5 = vld [vmem:[#allocation6 + $0x58] ss:$40 sps:$4 sm:$0xff] (%p147_p2)   ;;  %vm1668_vm2 = vcmask (%p147_p2), 1041409  }
  0xc7   :  { %568 = vmatprep.subr.bf16.mxu1 (%p147_p2), %v2982_v1  ;;  %2808 = vmatpush3.bf16.msra.mxu0 (%p147_p2), %v2981_v0  ;;  %v2985_v4 = vld [vmem:[#allocation6 + $0x50] ss:$40 sps:$4 sm:$0xff] (%p147_p2)   ;;  %v2988_v6 = vld [vmem:[#allocation6 + $0x54] ss:$40 sps:$4 sm:$0xff] (%p147_p2)   ;;  %v2989_v7 = vld [vmem:[#allocation6 + $0xa0] ss:$40 sps:$4 sm:$0xff] (%p147_p2)  }
  0xc8   :  { %569 = vmatpush1.bf16.msra.mxu1 (%p147_p2), %v2984_v2  ;;  %2809 = vmatprep.subr.bf16.mxu0 (%p147_p2), %v2985_v4  ;;  %v2990_v8 = vld [vmem:[#allocation6 + $0xa8] ss:$40 sps:$4 sm:$0xff] (%p147_p2)   ;;  %v2992_v9 = vld [vmem:[#allocation6 + $0xa4] ss:$40 sps:$4 sm:$0xff] (%p147_p2)   ;;  %v2994_v11 = vld [vmem:[#allocation6 + $0xf8] ss:$40 sps:$4 sm:$0xff] (%p147_p2)  }
  0xc9   :  { %570 = vmatprep.subr.bf16.mxu1 (%p147_p2), %v2986_v5  ;;  %v2993_v10 = vld [vmem:[#allocation6 + $0xf0] ss:$40 sps:$4 sm:$0xff] (%p147_p2)   ;;  %v2996_v12 = vld [vmem:[#allocation6 + $0xf4] ss:$40 sps:$4 sm:$0xff] (%p147_p2)   ;;  %v2997_v13 = vld [vmem:[#allocation6 + $0x140] ss:$40 sps:$4 sm:$0xff] (%p147_p2)  }
  0xca   :  { %v2998_v14 = vld [vmem:[#allocation6 + $0x148] ss:$40 sps:$4 sm:$0xff] (%p147_p2)   ;;  %v3000_v15 = vld [vmem:[#allocation6 + $0x144] ss:$40 sps:$4 sm:$0xff] (%p147_p2)   ;;  %v3002_v17 = vld [vmem:[#allocation6 + $0x198] ss:$40 sps:$4 sm:$0xff] (%p147_p2)  }
  0xcb   :  { %2810 = vmatpush3.bf16.msra.mxu0 (%p147_p2), %v2985_v4  ;;  %v3001_v16 = vld [vmem:[#allocation6 + $0x190] ss:$40 sps:$4 sm:$0xff] (%p147_p2)   ;;  %v153_v18 = vld [vmem:[#allocation2] sm:$0xff] (%p147_p2)  ;;  %v3004_v19 = vld [vmem:[#allocation6 + $0x194] ss:$40 sps:$4 sm:$0xff] (%p147_p2)   ;;  %vm1670_vm4 = vcmask (%p147_p2), 1042434  }
  0xcc   :  { %571 = vmatpush1.bf16.msra.mxu1 (%p147_p2), %v2988_v6  ;;  %2811 = vmatprep.subr.bf16.mxu0 (%p147_p2), %v2989_v7  ;;  %v154_v20 = vld [vmem:[#allocation2 + $0x8] sm:$0xff] (%p147_p2)  ;;  %v3009_v25 = vld [vmem:[#allocation6 + $0x230] ss:$40 sps:$4 sm:$0xff] (%p147_p2)   ;;  %v3012_v27 = vld [vmem:[#allocation6 + $0x234] ss:$40 sps:$4 sm:$0xff] (%p147_p2)   ;;  %vm1672_vm5 = vcmask (%p147_p2), 1043459  }
  0xcd   :  { %572 = vmatprep.subr.bf16.mxu1 %v2990_v8  ;;  %v3005_v21 = vld [vmem:[#allocation6 + $0x1e0] ss:$40 sps:$4 sm:$0xff]   ;;  %v3571_v22 = vpack.c.bf16 %v154_v20, %v153_v18  ;;  %v3008_v24 = vld [vmem:[#allocation6 + $0x1e4] ss:$40 sps:$4 sm:$0xff]   ;;  %v156_v29 = vld [vmem:[#allocation2 + $0x18] sm:$0xff]  ;;  %s3413_s1 = smov [#allocation15]  }
  0xce   :  { %v3006_v23 = vld [vmem:[#allocation6 + $0x1e8] ss:$40 sps:$4 sm:$0xff]   ;;  %v3010_v26 = vld [vmem:[#allocation6 + $0x238] ss:$40 sps:$4 sm:$0xff]   ;;  %v3016_v31 = vld [vmem:[#allocation6 + $0x14] ss:$40 sps:$4 sm:$0xff]   ;;  %v3574_v33 = vpack.c.bf16 %v156_v29, %v155_v28 }
  0xcf   :  { %2812 = vmatpush3.bf16.msra.mxu0 %v2989_v7  ;;  %2823 = vmatprep.mubr.bf16.mxu0 %v3571_v22  ;;  %v3015_v30 = vld [vmem:[#allocation6 + $0x10] ss:$40 sps:$4 sm:$0xff]   ;;  %v157_v32 = vld [vmem:[#allocation2 + $0x20] sm:$0xff]  ;;  %v158_v34 = vld [vmem:[#allocation2 + $0x28] sm:$0xff]  ;;  %s2512_s24 = sshll.u32 %s3413_s1, 4  ;;  %s2513_s24 = int_to_ptr.vmem [resolvable:$true] %s2512_s24 }
  0xd0   :  { %573 = vmatpush1.bf16.msra.mxu1 %v2992_v9  ;;  %2813 = vmatprep.subr.bf16.mxu0 %v2993_v10  ;;  %v3013_v35 = vld [vmem:[#allocation6 + $0xc] ss:$40 sps:$4 sm:$0xff]   ;;  %v3019_v36 = vld [vmem:[#allocation6 + $0x60] ss:$40 sps:$4 sm:$0xff]   ;;  %v3017_v37 = vld [vmem:[#allocation6 + $0x5c] ss:$40 sps:$4 sm:$0xff]   ;;  %v3576_v39 = vpack.c.bf16 %v158_v34, %v157_v32  ;;  %p3336_p4 = scmp.lt.s32.totalorder %s2513_s24, %s2513_s24 }
  0xd1   :  { %574 = vmatprep.subr.bf16.mxu1 %v2994_v11  ;;  %v3020_v38 = vld [vmem:[#allocation6 + $0x64] ss:$40 sps:$4 sm:$0xff]   ;;  %v159_v40 = vld [vmem:[#allocation2 + $0x30] sm:$0xff]  ;;  %v160_v41 = vld [vmem:[#allocation2 + $0x38] sm:$0xff]  ;;  %s3331_s25 = scalar_lea.vmem %s2513_s24, 64 }
  0xd2   :  { %v3023_v42 = vld [vmem:[#allocation6 + $0xb0] ss:$40 sps:$4 sm:$0xff]   ;;  %v3024_v43 = vld [vmem:[#allocation6 + $0xb4] ss:$40 sps:$4 sm:$0xff]   ;;  %v3582_v44 = vpack.c.bf16 %v160_v41, %v159_v40  ;;  %v3027_v46 = vld [vmem:[#allocation6 + $0x100] ss:$40 sps:$4 sm:$0xff]   ;;  %p3332_p3 = scmp.ne.s32.totalorder %s2513_s24, %s3331_s25  ;;  %p3337_p5 = scmp.lt.s32.totalorder %s3331_s25, %s3331_s25 }
  0xd3   :  { %2814 = vmatpush3.bf16.msra.mxu0 %v2993_v10  ;;  %v3021_v45 = vld [vmem:[#allocation6 + $0xac] ss:$40 sps:$4 sm:$0xff]   ;;  %v3025_v48 = vld [vmem:[#allocation6 + $0xfc] ss:$40 sps:$4 sm:$0xff]   ;;  %v3031_v49 = vld [vmem:[#allocation6 + $0x150] ss:$40 sps:$4 sm:$0xff]  }
  0xd4   :  { %575 = vmatpush1.bf16.msra.mxu1 %v2996_v12  ;;  %2815 = vmatprep.subr.bf16.mxu0 %v2997_v13  ;;  %v3028_v47 = vld [vmem:[#allocation6 + $0x104] ss:$40 sps:$4 sm:$0xff]   ;;  %v3032_v50 = vld [vmem:[#allocation6 + $0x154] ss:$40 sps:$4 sm:$0xff]   ;;  %v3035_v52 = vld [vmem:[#allocation6 + $0x1a0] ss:$40 sps:$4 sm:$0xff]   ;;  %p3338_p6 = por %p3337_p5, %p3336_p4 }
  0xd5   :  { %576 = vmatprep.subr.bf16.mxu1 %v2998_v14  ;;  %v3029_v51 = vld [vmem:[#allocation6 + $0x14c] ss:$40 sps:$4 sm:$0xff]   ;;  %v3033_v54 = vld [vmem:[#allocation6 + $0x19c] ss:$40 sps:$4 sm:$0xff]   ;;  %v3039_v55 = vld [vmem:[#allocation6 + $0x1f0] ss:$40 sps:$4 sm:$0xff]  }
  0xd6   :  { %v3036_v53 = vld [vmem:[#allocation6 + $0x1a4] ss:$40 sps:$4 sm:$0xff]   ;;  %v3040_v56 = vld [vmem:[#allocation6 + $0x1f4] ss:$40 sps:$4 sm:$0xff]   ;;  %v3043_v58 = vld [vmem:[#allocation6 + $0x240] ss:$40 sps:$4 sm:$0xff]   ;;  %p3339_p7 = pnand %p3338_p6, %p3332_p3 }
  0xd7   :  { %2816 = vmatpush3.bf16.msra.mxu0 %v2997_v13  ;;  %v3037_v57 = vld [vmem:[#allocation6 + $0x1ec] ss:$40 sps:$4 sm:$0xff]   ;;  %v3041_v60 = vld [vmem:[#allocation6 + $0x23c] ss:$40 sps:$4 sm:$0xff]   ;;  %v3045_v62 = vld [vmem:[#allocation6 + $0x18] ss:$40 sps:$4 sm:$0xff]  }
  0xd8   :  { %577 = vmatpush1.bf16.msra.mxu1 %v3000_v15  ;;  %2817 = vmatprep.subr.bf16.mxu0 %v3001_v16  ;;  %v3044_v59 = vld [vmem:[#allocation6 + $0x244] ss:$40 sps:$4 sm:$0xff]   ;;  %v3048_v0 = vld [vmem:[#allocation6 + $0x20] ss:$40 sps:$4 sm:$0xff]   ;;  %v3056_v2 = vld [vmem:[#allocation6 + $0x74] ss:$40 sps:$4 sm:$0xff]  }
  0xd9   :  { %578 = vmatprep.subr.bf16.mxu1 %v3002_v17  ;;  %v3047_v61 = vld [vmem:[#allocation6 + $0x1c] ss:$40 sps:$4 sm:$0xff]   ;;  %v3053_v1 = vld [vmem:[#allocation6 + $0x6c] ss:$40 sps:$4 sm:$0xff]   ;;  %v3051_v4 = vld [vmem:[#allocation6 + $0x68] ss:$40 sps:$4 sm:$0xff]  }
  0xda   :  { %v3050_v63 = vld [vmem:[#allocation6 + $0x24] ss:$40 sps:$4 sm:$0xff]   ;;  %v3054_v5 = vld [vmem:[#allocation6 + $0x70] ss:$40 sps:$4 sm:$0xff]   ;;  %v3060_v9 = vld [vmem:[#allocation6 + $0xc0] ss:$40 sps:$4 sm:$0xff]  }
  0xdb   :  { %2818 = vmatpush3.bf16.msra.mxu0 %v3001_v16  ;;  %v3059_v6 = vld [vmem:[#allocation6 + $0xbc] ss:$40 sps:$4 sm:$0xff]   ;;  %v3057_v8 = vld [vmem:[#allocation6 + $0xb8] ss:$40 sps:$4 sm:$0xff]   ;;  %v3065_v10 = vld [vmem:[#allocation6 + $0x10c] ss:$40 sps:$4 sm:$0xff]  }
  0xdc   :  { %579 = vmatpush1.bf16.msra.mxu1 %v3004_v19  ;;  %2819 = vmatprep.subr.bf16.mxu0 %v3005_v21  ;;  %v3062_v7 = vld [vmem:[#allocation6 + $0xc4] ss:$40 sps:$4 sm:$0xff]   ;;  %v3068_v11 = vld [vmem:[#allocation6 + $0x114] ss:$40 sps:$4 sm:$0xff]   ;;  %v3063_v12 = vld [vmem:[#allocation6 + $0x108] ss:$40 sps:$4 sm:$0xff]  }
  0xdd   :  { %580 = vmatprep.subr.bf16.mxu1 %v3006_v23  ;;  %v3066_v13 = vld [vmem:[#allocation6 + $0x110] ss:$40 sps:$4 sm:$0xff]   ;;  %v3071_v14 = vld [vmem:[#allocation6 + $0x15c] ss:$40 sps:$4 sm:$0xff]   ;;  %v3072_v17 = vld [vmem:[#allocation6 + $0x160] ss:$40 sps:$4 sm:$0xff]  }
  0xde   :  { %v3074_v15 = vld [vmem:[#allocation6 + $0x164] ss:$40 sps:$4 sm:$0xff]   ;;  %v3069_v16 = vld [vmem:[#allocation6 + $0x158] ss:$40 sps:$4 sm:$0xff]   ;;  %v3080_v19 = vld [vmem:[#allocation6 + $0x1b4] ss:$40 sps:$4 sm:$0xff]  }
  0xdf   :  { %2820 = vmatpush3.bf16.msra.mxu0 %v3005_v21  ;;  %v3077_v18 = vld [vmem:[#allocation6 + $0x1ac] ss:$40 sps:$4 sm:$0xff]   ;;  %v3075_v20 = vld [vmem:[#allocation6 + $0x1a8] ss:$40 sps:$4 sm:$0xff]   ;;  %v3083_v23 = vld [vmem:[#allocation6 + $0x1fc] ss:$40 sps:$4 sm:$0xff]  }
  0xe0   :  { %581 = vmatpush1.bf16.msra.mxu1 %v3008_v24  ;;  %2821 = vmatprep.subr.bf16.mxu0 %v3009_v25  ;;  %v3078_v21 = vld [vmem:[#allocation6 + $0x1b0] ss:$40 sps:$4 sm:$0xff]   ;;  %v3086_v24 = vld [vmem:[#allocation6 + $0x204] ss:$40 sps:$4 sm:$0xff]   ;;  %v3092_v28 = vld [vmem:[#allocation6 + $0x254] ss:$40 sps:$4 sm:$0xff]  }
  0xe1   :  { %582 = vmatprep.subr.bf16.mxu1 %v3010_v26  ;;  %v3084_v26 = vld [vmem:[#allocation6 + $0x200] ss:$40 sps:$4 sm:$0xff]   ;;  %v3095_v32 = vld [vmem:[#allocation11 + $0x48] sm:$0xff]   ;;  %v3097_v34 = vld [vmem:[#allocation11 + $0x50] sm:$0xff]  }
  0xe2   :  { %v3087_v29 = vld [vmem:[#allocation6 + $0x248] ss:$40 sps:$4 sm:$0xff]   ;;  %v3105_v41 = vld [vmem:[#allocation11 + $0x70] sm:$0xff]  }
  0xe3   :  { %2822 = vmatpush3.bf16.msra.mxu0 %v3009_v25  ;;  %v3081_v25 = vld [vmem:[#allocation6 + $0x1f8] ss:$40 sps:$4 sm:$0xff]   ;;  %v3104_v40 = vld [vmem:[#allocation11 + $0x28] sm:$0xff]  }
  0xe4   :  { %583 = vmatpush1.bf16.msra.mxu1 %v3012_v27  ;;  %906 = vmatprep.subr.bf16.mxu0 %v3015_v30  ;;  %v3089_v27 = vld [vmem:[#allocation6 + $0x24c] ss:$40 sps:$4 sm:$0xff]   ;;  %v3090_v30 = vld [vmem:[#allocation6 + $0x250] ss:$40 sps:$4 sm:$0xff]  }
  0xe5   :  { %2831 = vmatprep.subr.bf16.mxu1 %v3016_v31 }
  0xe6   :  { %2824 = vmatmul.mubr.bf16.vlgmr.msra.gmra.mrb[0].mxu0 %v3574_v33 }
  0xe7   :  { %601 = vmatmul.mubr.bf16.vlgmr.msra.gmra.mrb[0].mxu1 %v3571_v22  ;;  %907 = vmatpush1.bf16.msra.mxu0 %v3013_v35  ;;  %v3098_v35 = vld [vmem:[#allocation11 + $0x10] sm:$0xff]  }
  0xe8   :  { %2832 = vmatpush3.bf16.msra.mxu1 %v3016_v31  ;;  %908 = vmatprep.subr.bf16.mxu0 %v3019_v36  ;;  %v3094_v31 = vld [vmem:[#allocation11] sm:$0xff]   ;;  %v3099_v36 = vld [vmem:[#allocation11 + $0x58] sm:$0xff]  }
  0xe9   :  { %2833 = vmatprep.subr.bf16.mxu1 %v3020_v38  ;;  %2827 = vmatprep.mubr.bf16.mxu0 %v3576_v39 }
  0xea   :  { %610 = vmatprep.mubr.bf16.mxu1 %v3410_v3 }
  0xeb   :  { %909 = vmatpush1.bf16.msra.mxu0 %v3017_v37  ;;  %v3100_v37 = vld [vmem:[#allocation11 + $0x18] sm:$0xff]  }
  0xec   :  { %2834 = vmatpush3.bf16.msra.mxu1 %v3020_v38  ;;  %910 = vmatprep.subr.bf16.mxu0 %v3023_v42  ;;  %v3102_v38 = vld [vmem:[#allocation11 + $0x20] sm:$0xff]   ;;  %v3106_v42 = vld [vmem:[#allocation11 + $0x30] sm:$0xff]  }
  0xed   :  { %2835 = vmatprep.subr.bf16.mxu1 %v3024_v43 }
  0xee   :  { %2828 = vmatmul.mubr.bf16.gmra.mrb[4].mxu0 %v3582_v44 }
  0xef   :  { %611 = vmatmul.mubr.bf16.gmra.mrb[4].mxu1 %v3574_v33  ;;  %911 = vmatpush1.bf16.msra.mxu0 %v3021_v45  ;;  %v3109_v45 = vld [vmem:[#allocation11 + $0xc0] sm:$0xff]  }
  0xf0   :  { %2836 = vmatpush3.bf16.msra.mxu1 %v3024_v43  ;;  %912 = vmatprep.subr.bf16.mxu0 %v3027_v46  ;;  %v3107_v43 = vld [vmem:[#allocation11 + $0x78] sm:$0xff]   ;;  %v3110_v46 = vld [vmem:[#allocation11 + $0x80] sm:$0xff]  }
  0xf1   :  { %2837 = vmatprep.subr.bf16.mxu1 %v3028_v47  ;;  %620 = vmatprep.mubr.bf16.mxu1 %v3410_v3 }
  0xf2   :  { %938 = vmatprep.mubr.bf16.mxu0 %v3410_v3 }
  0xf3   :  { %913 = vmatpush1.bf16.msra.mxu0 %v3025_v48  ;;  %v3112_v48 = vld [vmem:[#allocation11 + $0x88] sm:$0xff]  }
  0xf4   :  { %2838 = vmatpush3.bf16.msra.mxu1 %v3028_v47  ;;  %914 = vmatprep.subr.bf16.mxu0 %v3031_v49  ;;  %v3111_v47 = vld [vmem:[#allocation11 + $0xc8] sm:$0xff]   ;;  %v3113_v49 = vld [vmem:[#allocation11 + $0xd0] sm:$0xff]  }
  0xf5   :  { %2839 = vmatprep.subr.bf16.mxu1 %v3032_v50 }
  0xf7   :  { %621 = vmatmul.mubr.bf16.gmra.mrb[8].mxu1 %v3576_v39  ;;  %915 = vmatpush1.bf16.msra.mxu0 %v3029_v51  ;;  %v3115_v51 = vld [vmem:[#allocation11 + $0xd8] sm:$0xff]  }
  0xf8   :  { %2840 = vmatpush3.bf16.msra.mxu1 %v3032_v50  ;;  %916 = vmatprep.subr.bf16.mxu0 %v3035_v52  ;;  %v3114_v50 = vld [vmem:[#allocation11 + $0x90] sm:$0xff]   ;;  %v3116_v52 = vld [vmem:[#allocation11 + $0x98] sm:$0xff]  }
  0xf9   :  { %2841 = vmatprep.subr.bf16.mxu1 %v3036_v53  ;;  %630 = vmatprep.mubr.bf16.mxu1 %v3410_v3 }
  0xfb   :  { %917 = vmatpush1.bf16.msra.mxu0 %v3033_v54  ;;  %v3118_v54 = vld [vmem:[#allocation11 + $0xa0] sm:$0xff]  }
  0xfc   :  { %2842 = vmatpush3.bf16.msra.mxu1 %v3036_v53  ;;  %918 = vmatprep.subr.bf16.mxu0 %v3039_v55  ;;  %v3117_v53 = vld [vmem:[#allocation11 + $0xe0] sm:$0xff]   ;;  %v3119_v55 = vld [vmem:[#allocation11 + $0xe8] sm:$0xff]  }
  0xfd   :  { %2843 = vmatprep.subr.bf16.mxu1 %v3040_v56 }
  0xff   :  { %631 = vmatmul.mubr.bf16.gmra.mrb[12].mxu1 %v3582_v44  ;;  %919 = vmatpush1.bf16.msra.mxu0 %v3037_v57  ;;  %v3120_v57 = vld [vmem:[#allocation11 + $0xa8] sm:$0xff]  }
 0x100   :  { %2844 = vmatpush3.bf16.msra.mxu1 %v3040_v56  ;;  %920 = vmatprep.subr.bf16.mxu0 %v3043_v58  ;;  %v166_v56 = vlaneseq  ;;  %v3121_v58 = vld [vmem:[#allocation11 + $0xf0] sm:$0xff]  }
 0x101   :  { %2845 = vmatprep.subr.bf16.mxu1 %v3044_v59  ;;  %2847 = vmatprep.mubr.bf16.mxu1 %v3571_v22 }
 0x103   :  { %921 = vmatpush1.bf16.msra.mxu0 %v3041_v60  ;;  %v3122_v60 = vld [vmem:[#allocation11 + $0xb0] sm:$0xff]  }
 0x104   :  { %2846 = vmatpush3.bf16.msra.mxu1 %v3044_v59  ;;  %1365 = vmatprep.subr.bf16.mxu0 %v3047_v61  ;;  %v3619_v59 = vshrl.u32 %v166_v56, 7  ;;  %v3123_v61 = vld [vmem:[#allocation11 + $0xf8] sm:$0xff]  }
 0x105   :  { %1438 = vmatprep.subr.bf16.mxu1 %v3050_v63  ;;  %v3124_v63 = vld [vmem:[#allocation11 + $0xb8] sm:$0xff]  }
 0x106   :  { %939 = vmatmul.mubr.bf16.vlgmr.msra.gmra.mrb[8].mxu0 %v3571_v22  ;;  %vm649_vm0 = vcmp.lt.s32.totalorder %v3619_v59, 7  ;;  %vm1076_vm8 = vcmp.lt.s32.totalorder %v3619_v59, 6  ;;  %vm1567_vm12 = vcmp.lt.s32.totalorder %v3619_v59, 5 }
 0x107   :  { %2848 = vmatmul.mubr.bf16.vlgmr.msra.gmra.mrb[16].mxu1 %v3574_v33  ;;  %1366 = vmatpush1.bf16.msra.mxu0 %v3045_v62  ;;  %v289_v62 = vsub.s32 0, %v3619_v59 }
 0x108   :  { %1439 = vmatpush1.bf16.msra.mxu1 %v3048_v0  ;;  %1367 = vmatprep.subr.bf16.mxu0 %v3053_v1  ;;  %v3622_v0 = vld [vmem:[#allocation9] sm:$0xf] }
 0x109   :  { %1440 = vmatprep.subr.bf16.mxu1 %v3056_v2  ;;  %948 = vmatprep.mubr.bf16.mxu0 %v3410_v3  ;;  %v290_v1 = vrot.slane %v3622_v0, %v289_v62 }
 0x10a   :  { %2851 = vmatprep.mubr.bf16.mxu1 %v3576_v39 }
 0x10b   :  { %1368 = vmatpush1.bf16.msra.mxu0 %v3051_v4 }
 0x10c   :  { %1441 = vmatpush1.bf16.msra.mxu1 %v3054_v5  ;;  %1369 = vmatprep.subr.bf16.mxu0 %v3059_v6 }
 0x10d   :  { %1442 = vmatprep.subr.bf16.mxu1 %v3062_v7 }
 0x10e   :  { %949 = vmatmul.mubr.bf16.gmra.mrb[12].mxu0 %v3574_v33 }
 0x10f   :  { %2852 = vmatmul.mubr.bf16.gmra.mrb[20].mxu1 %v3582_v44  ;;  %1370 = vmatpush1.bf16.msra.mxu0 %v3057_v8 }
 0x110   :  { %1443 = vmatpush1.bf16.msra.mxu1 %v3060_v9  ;;  %1371 = vmatprep.subr.bf16.mxu0 %v3065_v10 }
 0x111   :  { %1444 = vmatprep.subr.bf16.mxu1 %v3068_v11  ;;  %958 = vmatprep.mubr.bf16.mxu0 %v3410_v3 }
 0x112   :  { %1470 = vmatprep.mubr.bf16.mxu1 %v3410_v3 }
 0x113   :  { %1372 = vmatpush1.bf16.msra.mxu0 %v3063_v12 }
 0x114   :  { %1445 = vmatpush1.bf16.msra.mxu1 %v3066_v13  ;;  %1373 = vmatprep.subr.bf16.mxu0 %v3071_v14 }
 0x115   :  { %1446 = vmatprep.subr.bf16.mxu1 %v3074_v15 }
 0x116   :  { %959 = vmatmul.mubr.bf16.gmra.mrb[16].mxu0 %v3576_v39 }
 0x117   :  { %1374 = vmatpush1.bf16.msra.mxu0 %v3069_v16  ;;  %968 = vmatprep.mubr.bf16.mxu0 %v3410_v3 }
 0x118   :  { %1447 = vmatpush1.bf16.msra.mxu1 %v3072_v17  ;;  %1375 = vmatprep.subr.bf16.mxu0 %v3077_v18 }
 0x119   :  { %1448 = vmatprep.subr.bf16.mxu1 %v3080_v19 }
 0x11b   :  { %1376 = vmatpush1.bf16.msra.mxu0 %v3075_v20 }
 0x11c   :  { %1449 = vmatpush1.bf16.msra.mxu1 %v3078_v21  ;;  %1377 = vmatprep.subr.bf16.mxu0 %v3083_v23  ;;  %v668_v21 = vsub.s32 1, %v3619_v59  ;;  %v168_v23 = vadd.s32 8, %v3619_v59 }
 0x11d   :  { %1450 = vmatprep.subr.bf16.mxu1 %v3086_v24 }
 0x11e   :  { %969 = vmatmul.mubr.bf16.gmra.mrb[20].mxu0 %v3582_v44 }
 0x11f   :  { %1378 = vmatpush1.bf16.msra.mxu0 %v3081_v25  ;;  %1397 = vmatprep.mubr.bf16.mxu0 %v3410_v3 }
 0x120   :  { %1451 = vmatpush1.bf16.msra.mxu1 %v3084_v26  ;;  %1379 = vmatprep.subr.bf16.mxu0 %v3089_v27 }
 0x121   :  { %1452 = vmatprep.subr.bf16.mxu1 %v3092_v28 }
 0x123   :  { %1380 = vmatpush1.bf16.msra.mxu0 %v3087_v29 }
 0x124   :  { %1453 = vmatpush1.bf16.msra.mxu1 %v3090_v30 }
 0x125   :  { %2749 = vmatprep.subr.bf16.mxu1 %v3109_v45 }
 0x126   :  { %1398 = vmatmul.mubr.bf16.vlgmr.msra.gmra.mrb[24].mxu0 %v3571_v22 }
 0x127   :  { %1471 = vmatmul.mubr.bf16.vlgmr.msra.gmra.mrb[24].mxu1 %v3571_v22  ;;  %1407 = vmatprep.mubr.bf16.mxu0 %v3410_v3  ;;  %v3093_v22 = vld [vmem:[#allocation11 + $0x40] sm:$0xff]  }
 0x128   :  { %1480 = vmatprep.mubr.bf16.mxu1 %v3410_v3  ;;  %2727 = vmatprep.subr.bf16.mxu0 %v3093_v22 }
 0x129   :  { %2728 = vmatpush3.bf16.msra.mxu0 %v3094_v31  ;;  %2750 = vmatpush3.bf16.msra.mxu1 %v3110_v46 }
 0x12a   :  { %2729 = vmatprep.subr.bf16.mxu0 %v3095_v32  ;;  %2751 = vmatprep.subr.bf16.mxu1 %v3111_v47  ;;  %v170_v47 = vadd.s32 24, %v3619_v59 }
 0x12d   :  { %2752 = vmatpush3.bf16.msra.mxu1 %v3112_v48 }
 0x12e   :  { %1408 = vmatmul.mubr.bf16.gmra.mrb[28].mxu0 %v3574_v33  ;;  %2753 = vmatprep.subr.bf16.mxu1 %v3113_v49 }
 0x12f   :  { %1481 = vmatmul.mubr.bf16.gmra.mrb[28].mxu1 %v3574_v33  ;;  %1417 = vmatprep.mubr.bf16.mxu0 %v3410_v3  ;;  %v3096_v33 = vld [vmem:[#allocation11 + $0x8] sm:$0xff]  }
 0x130   :  { %1490 = vmatprep.mubr.bf16.mxu1 %v3410_v3  ;;  %2730 = vmatpush3.bf16.msra.mxu0 %v3096_v33  ;;  %v3640_v33 = vrot.slane %v3622_v0, %v668_v21 }
 0x131   :  { %2731 = vmatprep.subr.bf16.mxu0 %v3097_v34  ;;  %2754 = vmatpush3.bf16.msra.mxu1 %v3114_v50 }
 0x132   :  { %2755 = vmatprep.subr.bf16.mxu1 %v3115_v51 }
 0x134   :  { %2732 = vmatpush3.bf16.msra.mxu0 %v3098_v35  ;;  %v3642_v35 = vand.u32 15, %v168_v23 }
 0x135   :  { %2733 = vmatprep.subr.bf16.mxu0 %v3099_v36  ;;  %2756 = vmatpush3.bf16.msra.mxu1 %v3116_v52 }
 0x136   :  { %1418 = vmatmul.mubr.bf16.gmra.mrb[32].mxu0 %v3576_v39  ;;  %2757 = vmatprep.subr.bf16.mxu1 %v3117_v53  ;;  %vm687_vm1 = vcmp.lt.s32.totalorder %v3642_v35, 15  ;;  %vm1114_vm9 = vcmp.lt.s32.totalorder %v3642_v35, 14  ;;  %vm1605_vm14 = vcmp.lt.s32.totalorder %v3642_v35, 13 }
 0x137   :  { %1491 = vmatmul.mubr.bf16.gmra.mrb[32].mxu1 %v3576_v39  ;;  %1427 = vmatprep.mubr.bf16.mxu0 %v3410_v3  ;;  %v3103_v39 = vld [vmem:[#allocation11 + $0x68] sm:$0xff]  }
 0x138   :  { %1500 = vmatprep.mubr.bf16.mxu1 %v3410_v3  ;;  %2734 = vmatpush3.bf16.msra.mxu0 %v3100_v37  ;;  %v3101_v3 = vld [vmem:[#allocation11 + $0x60] sm:$0xff]  }
 0x139   :  { %2735 = vmatprep.subr.bf16.mxu0 %v3101_v3  ;;  %2758 = vmatpush3.bf16.msra.mxu1 %v3118_v54 }
 0x13a   :  { %2759 = vmatprep.subr.bf16.mxu1 %v3119_v55 }
 0x13c   :  { %2736 = vmatpush3.bf16.msra.mxu0 %v3102_v38 }
 0x13d   :  { %2737 = vmatprep.subr.bf16.mxu0 %v3103_v39  ;;  %2760 = vmatpush3.bf16.msra.mxu1 %v3120_v57 }
 0x13e   :  { %1428 = vmatmul.mubr.bf16.gmra.mrb[36].mxu0 %v3582_v44  ;;  %2761 = vmatprep.subr.bf16.mxu1 %v3121_v58 }
 0x13f   :  { %1501 = vmatmul.mubr.bf16.gmra.mrb[36].mxu1 %v3582_v44  ;;  %v3108_v44 = vld [vmem:[#allocation11 + $0x38] sm:$0xff]  }
 0x140   :  { %2738 = vmatpush3.bf16.msra.mxu0 %v3104_v40 }
 0x141   :  { %2739 = vmatprep.subr.bf16.mxu0 %v3105_v41  ;;  %2762 = vmatpush3.bf16.msra.mxu1 %v3122_v60 }
 0x142   :  { %2763 = vmatprep.subr.bf16.mxu1 %v3123_v61 }
 0x144   :  { %2740 = vmatpush3.bf16.msra.mxu0 %v3106_v42 }
 0x145   :  { %2741 = vmatprep.subr.bf16.mxu0 %v3107_v43  ;;  %2764 = vmatpush3.bf16.msra.mxu1 %v3124_v63 }
 0x148   :  { %2742 = vmatpush3.bf16.msra.mxu0 %v3108_v44 }
 0x1b9   :  { %v2825_v2 = vpop.f32.mrb[0].mxu0 }
 0x1ba   :  { %v382_v4 = vadd.f32 %v2825_v2, %v290_v1  ;;  %v602_v5 = vpop.f32.mrb[0].mxu1  ;;  %v373_v6 = vpop.f32.mrb[1].mxu0 }
 0x1bb   :  { %v374_v7 = vadd.f32 %v373_v6, %v290_v1  ;;  %v3627_v8 = vpop.f32.mrb[1].mxu1  ;;  %v2826_v9 = vpop.f32.mrb[2].mxu0 }
 0x1bc   :  { %v406_v10 = vmax.f32 %v382_v4, 0.0  ;;  %v641_v11 = vrot.slane %v3627_v8, 1  ;;  %v385_v12 = vadd.f32 %v2826_v9, %v290_v1  ;;  %v606_v13 = vpop.f32.mrb[2].mxu1  ;;  %v376_v14 = vpop.f32.mrb[3].mxu0  ;;  %v1095_v8 = vsub.s32 2, %v3619_v59 }
 0x1bd   :  { %v377_v15 = vadd.f32 %v376_v14, %v290_v1  ;;  %v608_v16 = vpop.f32.mrb[3].mxu1  ;;  %v404_v19 = vmax.f32 %v374_v7, 0.0  ;;  %v3652_v7 = vand.u32 15, %v170_v47 }
 0x1be   :  { %v407_v17 = vmax.f32 %v385_v12, 0.0  ;;  %v642_v18 = vrot.slane %v608_v16, 1 }
 0x1bf   :  { %v405_v20 = vmax.f32 %v377_v15, 0.0  ;;  %vm689_vm3 = vcmp.lt.s32.totalorder %v3652_v7, 15  ;;  %vm1116_vm10 = vcmp.lt.s32.totalorder %v3652_v7, 14  ;;  %vm1607_vm15 = vcmp.lt.s32.totalorder %v3652_v7, 13 }
 0x1c0   :  { %v451_v24 = vmax.f32 %v406_v10, %v407_v17  ;;  %v656_v25 = vsel %vm649_vm0, %v641_v11, %v642_v18 }
 0x1c1   :  { %v444_v26 = vmax.f32 %v404_v19, %v405_v20  ;;  %v658_v27 = vadd.f32 %v656_v25, %v602_v5  ;;  %v2829_v28 = vpop.f32.mrb[4].mxu0  ;;  %v172_v25 = vadd.s32 40, %v3619_v59 }
 0x1c2   :  { %v452_v29 = vrot.slane %v451_v24, 4  ;;  %v398_v30 = vadd.f32 %v2829_v28, %v290_v1  ;;  %v612_v22 = vpop.f32.mrb[4].mxu1  ;;  %v389_v31 = vpop.f32.mrb[5].mxu0 }
 0x1c3   :  { %v445_v32 = vrot.slane %v444_v26, 4  ;;  %v390_v34 = vadd.f32 %v389_v31, %v290_v1  ;;  %v614_v36 = vpop.f32.mrb[5].mxu1  ;;  %v2830_v37 = vpop.f32.mrb[6].mxu0  ;;  %v670_v57 = vadd.f32 %v3640_v33, %v658_v27  ;;  %v174_v31 = vadd.s32 56, %v3619_v59 }
 0x1c4   :  { %v453_v3 = vmax.f32 %v451_v24, %v452_v29  ;;  %v410_v38 = vmax.f32 %v398_v30, 0.0  ;;  %v643_v39 = vrot.slane %v614_v36, 1  ;;  %v401_v40 = vadd.f32 %v2830_v37, %v290_v1  ;;  %v616_v41 = vpop.f32.mrb[6].mxu1  ;;  %v392_v42 = vpop.f32.mrb[7].mxu0 }
 0x1c5   :  { %v446_v43 = vmax.f32 %v444_v26, %v445_v32  ;;  %v408_v44 = vmax.f32 %v390_v34, 0.0  ;;  %v393_v45 = vadd.f32 %v392_v42, %v290_v1  ;;  %v618_v46 = vpop.f32.mrb[7].mxu1  ;;  %v678_v15 = vmax.f32 %v670_v57, 0.0 }
 0x1c6   :  { %v454_v48 = vrot.slane %v453_v3, 2  ;;  %v655_v49 = vsel %vm649_vm0, %v642_v18, %v643_v39  ;;  %v411_v50 = vmax.f32 %v401_v40, 0.0  ;;  %v644_v51 = vrot.slane %v618_v46, 1 }
 0x1c7   :  { %v447_v52 = vrot.slane %v446_v43, 2  ;;  %v659_v53 = vadd.f32 %v655_v49, %v606_v13  ;;  %v409_v54 = vmax.f32 %v393_v45, 0.0  ;;  %v3664_v46 = vand.u32 15, %v172_v25 }
 0x1c8   :  { %v455_v55 = vmax.f32 %v453_v3, %v454_v48  ;;  %v465_v58 = vmax.f32 %v410_v38, %v411_v50  ;;  %v654_v60 = vsel %vm649_vm0, %v643_v39, %v644_v51 }
 0x1c9   :  { %v448_v61 = vmax.f32 %v446_v43, %v447_v52  ;;  %v671_v63 = vadd.f32 %v3640_v33, %v659_v53  ;;  %v458_v1 = vmax.f32 %v408_v44, %v409_v54  ;;  %v660_v2 = vadd.f32 %v654_v60, %v612_v22 }
 0x1ca   :  { %v456_v4 = vrot.slane %v455_v55, 1  ;;  %v466_v5 = vrot.slane %v465_v58, 4  ;;  %v622_v6 = vpop.f32.mrb[8].mxu1  ;;  %vm691_vm6 = vcmp.lt.s32.totalorder %v3664_v46, 15  ;;  %vm1118_vm11 = vcmp.lt.s32.totalorder %v3664_v46, 14 }
 0x1cb   :  { %v449_v9 = vrot.slane %v448_v61, 1  ;;  %v679_v10 = vmax.f32 %v671_v63, 0.0  ;;  %v459_v12 = vrot.slane %v458_v1, 4  ;;  %v624_v13 = vpop.f32.mrb[9].mxu1  ;;  %v672_v37 = vadd.f32 %v3640_v33, %v660_v2 }
 0x1cc   :  { %v457_v14 = vmax.f32 %v455_v55, %v456_v4  ;;  %v467_v16 = vmax.f32 %v465_v58, %v466_v5  ;;  %v645_v17 = vrot.slane %v624_v13, 1  ;;  %v626_v18 = vpop.f32.mrb[10].mxu1 }
 0x1cd   :  { %v450_v19 = vmax.f32 %v448_v61, %v449_v9  ;;  %v711_v20 = vsel %vm687_vm1, %v679_v10, 0.0  ;;  %v460_v23 = vmax.f32 %v458_v1, %v459_v12  ;;  %v628_v24 = vpop.f32.mrb[11].mxu1  ;;  %v680_v48 = vmax.f32 %v672_v37, 0.0 }
 0x1ce   :  { %v718_v26 = vmax.f32 %v678_v15, %v711_v20  ;;  %v468_v27 = vrot.slane %v467_v16, 2  ;;  %v653_v28 = vsel %vm649_vm0, %v644_v51, %v645_v17  ;;  %v646_v29 = vrot.slane %v628_v24, 1 }
 0x1cf   :  { %v461_v30 = vrot.slane %v460_v23, 2  ;;  %v661_v22 = vadd.f32 %v653_v28, %v616_v41  ;;  %v1669_v32 = vsel %vm1668_vm2, %v457_v14, %v450_v19  ;;  %v3666_v51 = vand.u32 15, %v174_v31 }
 0x1d0   :  { %v719_v34 = vrot.slane %v718_v26, 4  ;;  %v469_v36 = vmax.f32 %v467_v16, %v468_v27  ;;  %v652_v3 = vsel %vm649_vm0, %v645_v17, %v646_v29 }
 0x1d1   :  { %v462_v38 = vmax.f32 %v460_v23, %v461_v30  ;;  %v673_v39 = vadd.f32 %v3640_v33, %v661_v22  ;;  %v662_v40 = vadd.f32 %v652_v3, %v622_v6  ;;  %vm693_vm7 = vcmp.lt.s32.totalorder %v3666_v51, 15 }
 0x1d2   :  { %v470_v42 = vrot.slane %v469_v36, 1  ;;  %v632_v43 = vpop.f32.mrb[12].mxu1  ;;  %v720_v41 = vmax.f32 %v718_v26, %v719_v34  ;;  %vm1120_vm13 = vcmp.lt.s32.totalorder %v3666_v51, 14  ;;  %vm1611_vm1 = vcmp.lt.s32.totalorder %v3666_v51, 13 }
 0x1d3   :  { %v463_v44 = vrot.slane %v462_v38, 1  ;;  %v681_v45 = vmax.f32 %v673_v39, 0.0  ;;  %v634_v47 = vpop.f32.mrb[13].mxu1  ;;  %v674_v58 = vadd.f32 %v3640_v33, %v662_v40 }
 0x1d4   :  { %v647_v49 = vrot.slane %v634_v47, 1  ;;  %v636_v50 = vpop.f32.mrb[14].mxu1  ;;  %v471_v52 = vmax.f32 %v469_v36, %v470_v42  ;;  %v721_v63 = vrot.slane %v720_v41, 2 }
 0x1d5   :  { %v464_v53 = vmax.f32 %v462_v38, %v463_v44  ;;  %v713_v54 = vsel %vm689_vm3, %v681_v45, 0.0  ;;  %v638_v55 = vpop.f32.mrb[15].mxu1  ;;  %v682_v16 = vmax.f32 %v674_v58, 0.0 }
 0x1d6   :  { %v725_v57 = vmax.f32 %v680_v48, %v713_v54  ;;  %v651_v60 = vsel %vm649_vm0, %v646_v29, %v647_v49  ;;  %v648_v61 = vrot.slane %v638_v55, 1  ;;  %v722_v25 = vmax.f32 %v720_v41, %v721_v63 }
 0x1d7   :  { %v663_v1 = vadd.f32 %v651_v60, %v626_v18  ;;  %v1671_v2 = vsel %vm1670_vm4, %v464_v53, %v1669_v32 }
 0x1d8   :  { %v726_v4 = vrot.slane %v725_v57, 4  ;;  %v650_v5 = vsel %vm649_vm0, %v647_v49, %v648_v61  ;;  %v657_v6 = vsel %vm649_vm0, %v648_v61, %v641_v11  ;;  %v3682_v14 = vsel %vm1672_vm5, %v471_v52, %v1671_v2 }
 0x1d9   :  { %v675_v9 = vadd.f32 %v3640_v33, %v663_v1  ;;  %v664_v10 = vadd.f32 %v650_v5, %v632_v43  ;;  %v665_v12 = vadd.f32 %v657_v6, %v636_v50  ;;  %v940_v13 = vpop.f32.mrb[8].mxu0  ;;  %v723_v43 = vrot.slane %v722_v25, 1 }
 0x1da   :  { %v727_v15 = vmax.f32 %v725_v57, %v726_v4  ;;  %v3684_v17 = vpop.f32.mrb[9].mxu0  ;;  %v2849_v18 = vpop.f32.mrb[16].mxu1  ;;  %v3708_v57 = vrot.slane %v3622_v0, %v1095_v8 }
 0x1db   :  { %v683_v11 = vmax.f32 %v675_v9, 0.0  ;;  %v676_v19 = vadd.f32 %v3640_v33, %v664_v10  ;;  %v677_v20 = vadd.f32 %v3640_v33, %v665_v12  ;;  %v944_v23 = vpop.f32.mrb[10].mxu0  ;;  %v1013_v24 = vpop.f32.mrb[17].mxu1  ;;  %v1044_v27 = vrot.slane %v3684_v17, 1 }
 0x1dc   :  { %v728_v26 = vrot.slane %v727_v15, 2  ;;  %v1070_v28 = vrot.slane %v2849_v18, 2  ;;  %v946_v29 = vpop.f32.mrb[11].mxu0  ;;  %v1068_v30 = vrot.slane %v1013_v24, 2  ;;  %v2850_v22 = vpop.f32.mrb[18].mxu1  ;;  %v724_v4 = vmax.f32 %v722_v25, %v723_v43 }
 0x1dd   :  { %v715_v31 = vsel %vm691_vm6, %v683_v11, 0.0  ;;  %v684_v32 = vmax.f32 %v676_v19, 0.0  ;;  %v685_v34 = vmax.f32 %v677_v20, 0.0  ;;  %v1045_v36 = vrot.slane %v946_v29, 1  ;;  %v1016_v37 = vpop.f32.mrb[19].mxu1 }
 0x1de   :  { %v732_v3 = vmax.f32 %v682_v16, %v715_v31  ;;  %v1071_v38 = vrot.slane %v2850_v22, 2  ;;  %v1069_v33 = vrot.slane %v1016_v37, 2  ;;  %v729_v39 = vmax.f32 %v727_v15, %v728_v26 }
 0x1df   :  { %v717_v40 = vsel %vm693_vm7, %v685_v34, 0.0  ;;  %v1058_v42 = vsel %vm649_vm0, %v1044_v27, %v1045_v36 }
 0x1e0   :  { %v733_v41 = vrot.slane %v732_v3, 4  ;;  %v739_v44 = vmax.f32 %v684_v32, %v717_v40  ;;  %v1060_v45 = vadd.f32 %v1058_v42, %v940_v13  ;;  %v1081_v47 = vsel %vm1076_vm8, %v1070_v28, %v1071_v38 }
 0x1e1   :  { %v1082_v48 = vsel %vm1076_vm8, %v1069_v33, %v1070_v28  ;;  %v1083_v49 = vsel %vm1076_vm8, %v1068_v30, %v1069_v33  ;;  %v950_v50 = vpop.f32.mrb[12].mxu0  ;;  %v730_v52 = vrot.slane %v729_v39, 1 }
 0x1e2   :  { %v734_v53 = vmax.f32 %v732_v3, %v733_v41  ;;  %v740_v54 = vrot.slane %v739_v44, 4  ;;  %v1085_v55 = vadd.f32 %v1083_v49, %v1060_v45  ;;  %v2853_v58 = vpop.f32.mrb[20].mxu1  ;;  %v952_v60 = vpop.f32.mrb[13].mxu0 }
 0x1e3   :  { %v1074_v61 = vrot.slane %v2853_v58, 2  ;;  %v1046_v63 = vrot.slane %v952_v60, 1  ;;  %v1029_v1 = vpop.f32.mrb[21].mxu1  ;;  %v954_v2 = vpop.f32.mrb[14].mxu0  ;;  %v731_v5 = vmax.f32 %v729_v39, %v730_v52 }
 0x1e4   :  { %v741_v6 = vmax.f32 %v739_v44, %v740_v54  ;;  %v1072_v9 = vrot.slane %v1029_v1, 2  ;;  %v2854_v10 = vpop.f32.mrb[22].mxu1  ;;  %v956_v12 = vpop.f32.mrb[15].mxu0  ;;  %v735_v13 = vrot.slane %v734_v53, 2  ;;  %v1097_v20 = vadd.f32 %v3708_v57, %v1085_v55 }
 0x1e5   :  { %v1057_v15 = vsel %vm649_vm0, %v1045_v36, %v1046_v63  ;;  %v1075_v16 = vrot.slane %v2854_v10, 2  ;;  %v1047_v18 = vrot.slane %v956_v12, 1  ;;  %v1032_v11 = vpop.f32.mrb[23].mxu1  ;;  %v1679_v19 = vsel %vm1668_vm2, %v731_v5, %v724_v4 }
 0x1e6   :  { %v1061_v24 = vadd.f32 %v1057_v15, %v944_v23  ;;  %v1080_v25 = vsel %vm1076_vm8, %v1071_v38, %v1072_v9  ;;  %v1073_v26 = vrot.slane %v1032_v11, 2  ;;  %v736_v31 = vmax.f32 %v734_v53, %v735_v13 }
 0x1e7   :  { %v3718_v28 = vsel %vm1076_vm8, %v1074_v61, %v1075_v16  ;;  %v3722_v29 = vsel %vm1076_vm8, %v1075_v16, %v1068_v30  ;;  %v1056_v22 = vsel %vm649_vm0, %v1046_v63, %v1047_v18  ;;  %v742_v38 = vrot.slane %v741_v6, 2 }
 0x1e8   :  { %v1086_v32 = vadd.f32 %v1082_v48, %v1061_v24  ;;  %v1062_v34 = vadd.f32 %v1056_v22, %v950_v50  ;;  %v1078_v23 = vsel %vm1076_vm8, %v1073_v26, %v1074_v61  ;;  %v1079_v36 = vsel %vm1076_vm8, %v1072_v9, %v1073_v26 }
 0x1e9   :  { %v960_v37 = vpop.f32.mrb[16].mxu0  ;;  %v737_v3 = vrot.slane %v736_v31, 1  ;;  %v743_v41 = vmax.f32 %v741_v6, %v742_v38  ;;  %v1105_v44 = vmax.f32 %v1097_v20, 0.0 }
 0x1ea   :  { %v1098_v33 = vadd.f32 %v3708_v57, %v1086_v32  ;;  %v1087_v39 = vadd.f32 %v1081_v47, %v1062_v34  ;;  %v962_v30 = vpop.f32.mrb[17].mxu0 }
 0x1eb   :  { %v1048_v40 = vrot.slane %v962_v30, 1  ;;  %v964_v42 = vpop.f32.mrb[18].mxu0  ;;  %v738_v43 = vmax.f32 %v736_v31, %v737_v3  ;;  %v744_v52 = vrot.slane %v743_v41, 1 }
 0x1ec   :  { %v1106_v45 = vmax.f32 %v1098_v33, 0.0  ;;  %v966_v48 = vpop.f32.mrb[19].mxu0  ;;  %v1099_v4 = vadd.f32 %v3708_v57, %v1087_v39 }
 0x1ed   :  { %v1055_v49 = vsel %vm649_vm0, %v1047_v18, %v1048_v40  ;;  %v1049_v50 = vrot.slane %v966_v48, 1  ;;  %v1680_v53 = vsel %vm1670_vm4, %v738_v43, %v1679_v19  ;;  %v745_v60 = vmax.f32 %v743_v41, %v744_v52 }
 0x1ee   :  { %v1138_v54 = vsel %vm1114_vm9, %v1106_v45, 0.0  ;;  %v1063_v55 = vadd.f32 %v1055_v49, %v954_v2  ;;  %v1699_v2 = vpack.c.bf16 %v3682_v14, %v3682_v14  ;;  %v1107_v20 = vmax.f32 %v1099_v4, 0.0 }
 0x1ef   :  { %v1145_v47 = vmax.f32 %v1105_v44, %v1138_v54  ;;  %v1054_v58 = vsel %vm649_vm0, %v1048_v40, %v1049_v50  ;;  %v1681_v5 = vsel %vm1672_vm5, %v745_v60, %v1680_v53 }
 0x1f0   :  { %v1088_v61 = vadd.f32 %v1080_v25, %v1063_v55  ;;  %v1064_v63 = vadd.f32 %v1054_v58, %v960_v37  ;;  %v1700_v12 = vpack.c.bf16 %v1681_v5, %v1681_v5 }
 0x1f1   :  { %v1146_v1 = vrot.slane %v1145_v47, 4  ;;  %v970_v6 = vpop.f32.mrb[20].mxu0 }
 0x1f2   :  { %v1100_v9 = vadd.f32 %v3708_v57, %v1088_v61  ;;  %v1089_v10 = vadd.f32 %v1079_v36, %v1064_v63  ;;  %v972_v13 = vpop.f32.mrb[21].mxu0  ;;  %1996 = vmatprep.mubr.bf16.mxu0 %v1700_v12 }
 0x1f3   :  { %v1147_v15 = vmax.f32 %v1145_v47, %v1146_v1  ;;  %v1050_v16 = vrot.slane %v972_v13, 1  ;;  %v974_v18 = vpop.f32.mrb[22].mxu0  ;;  %1997 = vmatmul.mubr.bf16.vlgmr.msra.gmra.mrb[40].mxu0 %v1699_v2 }
 0x1f4   :  { %v1108_v11 = vmax.f32 %v1100_v9, 0.0  ;;  %v976_v19 = vpop.f32.mrb[23].mxu0  ;;  %v1101_v22 = vadd.f32 %v3708_v57, %v1089_v10 }
 0x1f5   :  { %v1053_v24 = vsel %vm649_vm0, %v1049_v50, %v1050_v16  ;;  %v1051_v25 = vrot.slane %v976_v19, 1  ;;  %v1148_v32 = vrot.slane %v1147_v15, 2 }
 0x1f6   :  { %v1140_v26 = vsel %vm1116_vm10, %v1108_v11, 0.0  ;;  %v1065_v31 = vadd.f32 %v1053_v24, %v964_v42  ;;  %v1109_v41 = vmax.f32 %v1101_v22, 0.0  ;;  %v1586_v22 = vsub.s32 3, %v3619_v59 }
 0x1f7   :  { %v1152_v34 = vmax.f32 %v1107_v20, %v1140_v26  ;;  %v1052_v14 = vsel %vm649_vm0, %v1050_v16, %v1051_v25  ;;  %v1059_v36 = vsel %vm649_vm0, %v1051_v25, %v1044_v27 }
 0x1f8   :  { %v1090_v37 = vadd.f32 %v1078_v23, %v1065_v31  ;;  %v1066_v3 = vadd.f32 %v1052_v14, %v970_v6  ;;  %v1067_v38 = vadd.f32 %v1059_v36, %v974_v18  ;;  %v1149_v23 = vmax.f32 %v1147_v15, %v1148_v32 }
 0x1f9   :  { %v1153_v33 = vrot.slane %v1152_v34, 4  ;;  %v1399_v39 = vpop.f32.mrb[24].mxu0 }
 0x1fa   :  { %v1102_v30 = vadd.f32 %v3708_v57, %v1090_v37  ;;  %v1091_v40 = vadd.f32 %v3718_v28, %v1066_v3  ;;  %v1092_v42 = vadd.f32 %v3722_v29, %v1067_v38  ;;  %v3758_v17 = vpop.f32.mrb[25].mxu0  ;;  %v3760_v27 = vpop.f32.mrb[24].mxu1  ;;  %v1150_v11 = vrot.slane %v1149_v23, 1 }
 0x1fb   :  { %v1154_v43 = vmax.f32 %v1152_v34, %v1153_v33  ;;  %v1535_v44 = vrot.slane %v3760_v27, 2  ;;  %v1403_v45 = vpop.f32.mrb[26].mxu0  ;;  %v3763_v48 = vpop.f32.mrb[25].mxu1  ;;  %v1511_v55 = vrot.slane %v3758_v17, 1 }
 0x1fc   :  { %v1110_v49 = vmax.f32 %v1102_v30, 0.0  ;;  %v1103_v50 = vadd.f32 %v3708_v57, %v1091_v40  ;;  %v1104_v28 = vadd.f32 %v3708_v57, %v1092_v42  ;;  %v1559_v29 = vrot.slane %v3763_v48, 3  ;;  %v1405_v52 = vpop.f32.mrb[27].mxu0  ;;  %v1476_v53 = vpop.f32.mrb[26].mxu1 }
 0x1fd   :  { %v1155_v54 = vrot.slane %v1154_v43, 2  ;;  %v1512_v47 = vrot.slane %v1405_v52, 1  ;;  %v1536_v58 = vrot.slane %v1476_v53, 2  ;;  %v1478_v60 = vpop.f32.mrb[27].mxu1 }
 0x1fe   :  { %v1142_v61 = vsel %vm1118_vm11, %v1110_v49, 0.0  ;;  %v1111_v63 = vmax.f32 %v1103_v50, 0.0  ;;  %v1112_v1 = vmax.f32 %v1104_v28, 0.0  ;;  %v1560_v4 = vrot.slane %v1478_v60, 3 }
 0x1ff   :  { %v1156_v5 = vmax.f32 %v1154_v43, %v1155_v54  ;;  %v1159_v6 = vmax.f32 %v1109_v41, %v1142_v61  ;;  %v1525_v57 = vsel %vm649_vm0, %v1511_v55, %v1512_v47  ;;  %v1549_v9 = vsel %vm1076_vm8, %v1535_v44, %v1536_v58 }
 0x200   :  { %v1144_v10 = vsel %vm1120_vm13, %v1112_v1, 0.0  ;;  %v1527_v12 = vadd.f32 %v1525_v57, %v1399_v39  ;;  %v1574_v13 = vsel %vm1567_vm12, %v1559_v29, %v1560_v4  ;;  %v1151_v41 = vmax.f32 %v1149_v23, %v1150_v11 }
 0x201   :  { %v1157_v15 = vrot.slane %v1156_v5, 1  ;;  %v1160_v2 = vrot.slane %v1159_v6, 4  ;;  %v1166_v16 = vmax.f32 %v1111_v63, %v1144_v10  ;;  %v1409_v18 = vpop.f32.mrb[28].mxu0 }
 0x202   :  { %v1551_v19 = vadd.f32 %v1549_v9, %v1527_v12  ;;  %v1482_v20 = vpop.f32.mrb[28].mxu1  ;;  %v1411_v24 = vpop.f32.mrb[29].mxu0 }
 0x203   :  { %v1161_v25 = vmax.f32 %v1159_v6, %v1160_v2  ;;  %v1167_v26 = vrot.slane %v1166_v16, 4  ;;  %v1537_v31 = vrot.slane %v1482_v20, 2  ;;  %v1484_v32 = vpop.f32.mrb[29].mxu1  ;;  %v1413_v34 = vpop.f32.mrb[30].mxu0  ;;  %v1158_v14 = vmax.f32 %v1156_v5, %v1157_v15 }
 0x204   :  { %v1576_v36 = vadd.f32 %v1574_v13, %v1551_v19  ;;  %v1513_v37 = vrot.slane %v1411_v24, 1  ;;  %v1561_v3 = vrot.slane %v1484_v32, 3  ;;  %v1415_v38 = vpop.f32.mrb[31].mxu0  ;;  %v1486_v33 = vpop.f32.mrb[30].mxu1 }
 0x205   :  { %v1162_v39 = vrot.slane %v1161_v25, 2  ;;  %v1168_v30 = vmax.f32 %v1166_v16, %v1167_v26  ;;  %v1548_v40 = vsel %vm1076_vm8, %v1536_v58, %v1537_v31  ;;  %v1514_v42 = vrot.slane %v1415_v38, 1  ;;  %v1488_v43 = vpop.f32.mrb[31].mxu1 }
 0x206   :  { %v1524_v49 = vsel %vm649_vm0, %v1512_v47, %v1513_v37  ;;  %v1573_v50 = vsel %vm1567_vm12, %v1560_v4, %v1561_v3  ;;  %v1538_v28 = vrot.slane %v1486_v33, 2  ;;  %v3797_v58 = vrot.slane %v3622_v0, %v1586_v22 }
 0x207   :  { %v1163_v52 = vmax.f32 %v1161_v25, %v1162_v39  ;;  %v1169_v53 = vrot.slane %v1168_v30, 2  ;;  %v1528_v54 = vadd.f32 %v1524_v49, %v1403_v45  ;;  %v1523_v60 = vsel %vm649_vm0, %v1513_v37, %v1514_v42 }
 0x208   :  { %v1529_v61 = vadd.f32 %v1523_v60, %v1409_v18  ;;  %v1547_v23 = vsel %vm1076_vm8, %v1537_v31, %v1538_v28  ;;  %v1562_v47 = vrot.slane %v1488_v43, 3  ;;  %v1687_v6 = vsel %vm1668_vm2, %v1158_v14, %v1151_v41 }
 0x209   :  { %v1164_v63 = vrot.slane %v1163_v52, 1  ;;  %v1170_v1 = vmax.f32 %v1168_v30, %v1169_v53  ;;  %v1552_v4 = vadd.f32 %v1548_v40, %v1528_v54  ;;  %v1419_v5 = vpop.f32.mrb[32].mxu0  ;;  %v1588_v18 = vadd.f32 %v3797_v58, %v1576_v36 }
 0x20a   :  { %v1553_v45 = vadd.f32 %v1547_v23, %v1529_v61  ;;  %v1572_v57 = vsel %vm1567_vm12, %v1561_v3, %v1562_v47  ;;  %v1492_v9 = vpop.f32.mrb[32].mxu1  ;;  %v1421_v10 = vpop.f32.mrb[33].mxu0 }
 0x20b   :  { %v1171_v12 = vrot.slane %v1170_v1, 1  ;;  %v1577_v0 = vadd.f32 %v1573_v50, %v1552_v4  ;;  %v1539_v13 = vrot.slane %v1492_v9, 2  ;;  %v1515_v15 = vrot.slane %v1421_v10, 1  ;;  %v1494_v2 = vpop.f32.mrb[33].mxu1  ;;  %v1423_v16 = vpop.f32.mrb[34].mxu0 }
 0x20c   :  { %v1578_v11 = vadd.f32 %v1572_v57, %v1553_v45  ;;  %v1563_v19 = vrot.slane %v1494_v2, 3  ;;  %v1425_v20 = vpop.f32.mrb[35].mxu0  ;;  %v1496_v24 = vpop.f32.mrb[34].mxu1  ;;  %v1165_v25 = vmax.f32 %v1163_v52, %v1164_v63  ;;  %v1596_v43 = vmax.f32 %v1588_v18, 0.0 }
 0x20d   :  { %v1589_v26 = vadd.f32 %v3797_v58, %v1577_v0  ;;  %v1546_v31 = vsel %vm1076_vm8, %v1538_v28, %v1539_v13  ;;  %v1522_v32 = vsel %vm649_vm0, %v1514_v42, %v1515_v15  ;;  %v1516_v14 = vrot.slane %v1425_v20, 1  ;;  %v1498_v37 = vpop.f32.mrb[35].mxu1 }
 0x20e   :  { %v1530_v3 = vadd.f32 %v1522_v32, %v1413_v34  ;;  %v1571_v36 = vsel %vm1567_vm12, %v1562_v47, %v1563_v19  ;;  %v1540_v38 = vrot.slane %v1496_v24, 2  ;;  %v1564_v30 = vrot.slane %v1498_v37, 3 }
 0x20f   :  { %v1597_v33 = vmax.f32 %v1589_v26, 0.0  ;;  %v1521_v39 = vsel %vm649_vm0, %v1515_v15, %v1516_v14  ;;  %v1172_v40 = vmax.f32 %v1170_v1, %v1171_v12  ;;  %v1590_v35 = vadd.f32 %v3797_v58, %v1578_v11 }
 0x210   :  { %v1554_v41 = vadd.f32 %v1546_v31, %v1530_v3  ;;  %v1531_v49 = vadd.f32 %v1521_v39, %v1419_v5  ;;  %v1545_v42 = vsel %vm1076_vm8, %v1539_v13, %v1540_v38  ;;  %v1570_v34 = vsel %vm1567_vm12, %v1563_v19, %v1564_v30 }
 0x211   :  { %v1629_v50 = vsel %vm1605_vm14, %v1597_v33, 0.0  ;;  %v1429_v28 = vpop.f32.mrb[36].mxu0  ;;  %v1688_v52 = vsel %vm1670_vm4, %v1165_v25, %v1687_v6  ;;  %v1598_v19 = vmax.f32 %v1590_v35, 0.0 }
 0x212   :  { %v1636_v53 = vmax.f32 %v1596_v43, %v1629_v50  ;;  %v1579_v54 = vadd.f32 %v1571_v36, %v1554_v41  ;;  %v1555_v60 = vadd.f32 %v1545_v42, %v1531_v49  ;;  %v1502_v61 = vpop.f32.mrb[36].mxu1  ;;  %v1431_v23 = vpop.f32.mrb[37].mxu0  ;;  %v3822_v47 = vsel %vm1672_vm5, %v1172_v40, %v1688_v52 }
 0x213   :  { %v1541_v63 = vrot.slane %v1502_v61, 2  ;;  %v1517_v1 = vrot.slane %v1431_v23, 1  ;;  %v1504_v4 = vpop.f32.mrb[37].mxu1  ;;  %v1433_v5 = vpop.f32.mrb[38].mxu0 }
 0x214   :  { %v1637_v45 = vrot.slane %v1636_v53, 4  ;;  %v1591_v57 = vadd.f32 %v3797_v58, %v1579_v54  ;;  %v1580_v9 = vadd.f32 %v1570_v34, %v1555_v60  ;;  %v1565_v10 = vrot.slane %v1504_v4, 3  ;;  %v1506_v6 = vpop.f32.mrb[38].mxu1  ;;  %v1435_v12 = vpop.f32.mrb[39].mxu0 }
 0x215   :  { %v1544_v0 = vsel %vm1076_vm8, %v1540_v38, %v1541_v63  ;;  %v1520_v13 = vsel %vm649_vm0, %v1516_v14, %v1517_v1  ;;  %v1542_v15 = vrot.slane %v1506_v6, 2  ;;  %v1518_v2 = vrot.slane %v1435_v12, 1  ;;  %v1508_v18 = vpop.f32.mrb[39].mxu1 }
 0x216   :  { %v1638_v11 = vmax.f32 %v1636_v53, %v1637_v45  ;;  %v1599_v20 = vmax.f32 %v1591_v57, 0.0  ;;  %v1532_v24 = vadd.f32 %v1520_v13, %v1423_v16  ;;  %v1569_v25 = vsel %vm1567_vm12, %v1564_v30, %v1565_v10 }
 0x217   :  { %v1543_v26 = vsel %vm1076_vm8, %v1541_v63, %v1542_v15  ;;  %v1550_v31 = vsel %vm1076_vm8, %v1542_v15, %v1535_v44  ;;  %v1519_v32 = vsel %vm649_vm0, %v1517_v1, %v1518_v2  ;;  %v1526_v36 = vsel %vm649_vm0, %v1518_v2, %v1511_v55 }
 0x218   :  { %v1639_v14 = vrot.slane %v1638_v11, 2  ;;  %v1631_v37 = vsel %vm1607_vm15, %v1599_v20, 0.0  ;;  %v1556_v3 = vadd.f32 %v1544_v0, %v1532_v24  ;;  %v1533_v38 = vadd.f32 %v1519_v32, %v1429_v28  ;;  %v3127_v32 = vld [vmem:[#allocation12 + $0x10] sm:$0xff]  }
 0x219   :  { %v1643_v16 = vmax.f32 %v1598_v19, %v1631_v37  ;;  %v1566_v33 = vrot.slane %v1508_v18, 3  ;;  %v1592_v27 = vadd.f32 %v3797_v58, %v1580_v9  ;;  %v1534_v44 = vadd.f32 %v1526_v36, %v1433_v5  ;;  %v3130_v37 = vld [vmem:[#allocation12 + $0x28] sm:$0xff]   ;;  %v3133_v36 = vld [vmem:[#allocation12 + $0x40] sm:$0xff]  }
 0x21a   :  { %v1581_v39 = vadd.f32 %v1569_v25, %v1556_v3  ;;  %v1557_v40 = vadd.f32 %v1543_v26, %v1533_v38  ;;  %vm1609_vm0 = vcmp.lt.s32.totalorder %v3664_v46, 13  ;;  %v1640_v42 = vmax.f32 %v1638_v11, %v1639_v14  ;;  %v3125_v25 = vld [vmem:[#allocation12] sm:$0xff]   ;;  %v3128_v14 = vld [vmem:[#allocation12 + $0x18] sm:$0xff]   ;;  %v3131_v3 = vld [vmem:[#allocation12 + $0x30] sm:$0xff]  }
 0x21b   :  { %v1644_v30 = vrot.slane %v1643_v16, 4  ;;  %v1568_v43 = vsel %vm1567_vm12, %v1565_v10, %v1566_v33  ;;  %v1575_v7 = vsel %vm1567_vm12, %v1566_v33, %v1559_v29  ;;  %v1558_v41 = vadd.f32 %v1550_v31, %v1534_v44  ;;  %v3126_v31 = vld [vmem:[#allocation12 + $0x8] sm:$0xff]   ;;  %v3135_v33 = vld [vmem:[#allocation12 + $0x50] sm:$0xff]  }
 0x21c   :  { %v1593_v17 = vadd.f32 %v3797_v58, %v1581_v39  ;;  %v1582_v49 = vadd.f32 %v1568_v43, %v1557_v40  ;;  %v1600_v28 = vmax.f32 %v1592_v27, 0.0  ;;  %v1641_v60 = vrot.slane %v1640_v42, 1  ;;  %v3134_v38 = vld [vmem:[#allocation12 + $0x48] sm:$0xff]   ;;  %v3136_v27 = vld [vmem:[#allocation12 + $0x58] sm:$0xff]   ;;  %v3137_v39 = vld [vmem:[#allocation12 + $0x60] sm:$0xff]  }
 0x21d   :  { %v1645_v55 = vmax.f32 %v1643_v16, %v1644_v30  ;;  %v1583_v35 = vadd.f32 %v1575_v7, %v1558_v41  ;;  %v1701_v24 = vpack.c.bf16 %v3822_v47, %v3822_v47  ;;  %v3411_v26 = vmov 0.0   ;;  %v3129_v47 = vld [vmem:[#allocation12 + $0x20] sm:$0xff]   ;;  %v3132_v16 = vld [vmem:[#allocation12 + $0x38] sm:$0xff]   ;;  %v3138_v44 = vld [vmem:[#allocation12 + $0x68] sm:$0xff]  }
 0x21e   :  { %v1601_v50 = vmax.f32 %v1593_v17, 0.0  ;;  %v1594_v52 = vadd.f32 %v3797_v58, %v1582_v49  ;;  %v1642_v45 = vmax.f32 %v1640_v42, %v1641_v60  ;;  %2855 = vmatprep.subr.bf16.mxu0 %v3411_v26  ;;  %2875 = vmatprep.subr.bf16.mxu1 %v3411_v26  ;;  %v3883_v41 = vld [vmem:[#allocation14] sm:$0x1f]  ;;  %v3142_v60 = vld [vmem:[#allocation12 + $0x88] sm:$0xff]  }
 0x21f   :  { %v1646_v34 = vrot.slane %v1645_v55, 2  ;;  %v1595_v48 = vadd.f32 %v3797_v58, %v1583_v35  ;;  %2856 = vmatpush3.bf16.msra.mxu0 %v3125_v25 }
 0x220   :  { %v1633_v53 = vsel %vm1609_vm0, %v1601_v50, 0.0  ;;  %v1602_v54 = vmax.f32 %v1594_v52, 0.0  ;;  %2857 = vmatprep.subr.bf16.mxu0 %v3411_v26 }
 0x221   :  { %v1650_v29 = vmax.f32 %v1600_v28, %v1633_v53  ;;  %v1647_v61 = vmax.f32 %v1645_v55, %v1646_v34  ;;  %v1603_v23 = vmax.f32 %v1595_v48, 0.0  ;;  %v1771_v55 = vrot.slane %v3883_v41, %v289_v62  ;;  %v3141_v62 = vld [vmem:[#allocation12 + $0x80] sm:$0xff]  }
 0x223   :  { %v1651_v63 = vrot.slane %v1650_v29, 4  ;;  %v1648_v46 = vrot.slane %v1647_v61, 1  ;;  %v1635_v1 = vsel %vm1611_vm1, %v1603_v23, 0.0  ;;  %2858 = vmatpush3.bf16.msra.mxu0 %v3126_v31  ;;  %v3144_v23 = vld [vmem:[#allocation12 + $0x98] sm:$0xff]  }
 0x224   :  { %v1657_v5 = vmax.f32 %v1602_v54, %v1635_v1  ;;  %2859 = vmatprep.subr.bf16.mxu0 %v3411_v26  ;;  %v3140_v54 = vld [vmem:[#allocation12 + $0x78] sm:$0xff]   ;;  %v2065_v1 = vrot.slane %v3883_v41, %v668_v21  ;;  %v3150_v21 = vld [vmem:[#allocation12 + $0xc8] sm:$0xff]  }
 0x225   :  { %v1652_v4 = vmax.f32 %v1650_v29, %v1651_v63  ;;  %v1649_v57 = vmax.f32 %v1647_v61, %v1648_v46  ;;  %v3139_v29 = vld [vmem:[#allocation12 + $0x70] sm:$0xff]   ;;  %v3145_v63 = vld [vmem:[#allocation12 + $0xa0] sm:$0xff]   ;;  %v3146_v46 = vld [vmem:[#allocation12 + $0xa8] sm:$0xff]  }
 0x226   :  { %v1658_v9 = vrot.slane %v1657_v5, 4  ;;  %v3143_v61 = vld [vmem:[#allocation12 + $0x90] sm:$0xff]  }
 0x227   :  { %v1653_v10 = vrot.slane %v1652_v4, 2  ;;  %v1695_v6 = vsel %vm1668_vm2, %v1649_v57, %v1642_v45  ;;  %2860 = vmatpush3.bf16.msra.mxu0 %v3127_v32  ;;  %vm3412_vm2 = vmmov 0  }
 0x228   :  { %v1659_v12 = vmax.f32 %v1657_v5, %v1658_v9  ;;  %2861 = vmatprep.subr.bf16.mxu0 %v3411_v26  ;;  %2871 = vmatprep.mubr.msk.bf16.mxu0 %vm3412_vm2, %v3411_v26 }
 0x229   :  { %v1654_v58 = vmax.f32 %v1652_v4, %v1653_v10 }
 0x22a   :  { %v1660_v51 = vrot.slane %v1659_v12, 2 }
 0x22b   :  { %v1655_v0 = vrot.slane %v1654_v58, 1  ;;  %2862 = vmatpush3.bf16.msra.mxu0 %v3128_v14  ;;  %v3155_v14 = vld [vmem:[#allocation12 + $0xf0] sm:$0xff]  }
 0x22c   :  { %v1661_v15 = vmax.f32 %v1659_v12, %v1660_v51  ;;  %2863 = vmatprep.subr.bf16.mxu0 %v3411_v26  ;;  %v3147_v12 = vld [vmem:[#allocation12 + $0xb0] sm:$0xff]  }
 0x22d   :  { %v1656_v13 = vmax.f32 %v1654_v58, %v1655_v0  ;;  %v3148_v58 = vld [vmem:[#allocation12 + $0xb8] sm:$0xff]   ;;  %v3149_v0 = vld [vmem:[#allocation12 + $0xc0] sm:$0xff]   ;;  %v3151_v51 = vld [vmem:[#allocation12 + $0xd0] sm:$0xff]  }
 0x22e   :  { %v1662_v2 = vrot.slane %v1661_v15, 1 }
 0x22f   :  { %v1696_v18 = vsel %vm1670_vm4, %v1656_v13, %v1695_v6  ;;  %2864 = vmatpush3.bf16.msra.mxu0 %v3129_v47  ;;  %v3152_v13 = vld [vmem:[#allocation12 + $0xd8] sm:$0xff]   ;;  %vm2491_vm4 = vcmask 1043456  }
 0x230   :  { %v1663_v11 = vmax.f32 %v1661_v15, %v1662_v2  ;;  %2865 = vmatprep.subr.bf16.mxu0 %v3411_v26  ;;  %v3153_v15 = vld [vmem:[#allocation12 + $0xe0] sm:$0xff]   ;;  %v3154_v2 = vld [vmem:[#allocation12 + $0xe8] sm:$0xff]   ;;  %v3156_v47 = vld [vmem:[#allocation12 + $0xf8] sm:$0xff]  }
 0x232   :  { %v1697_v19 = vsel %vm1672_vm5, %v1663_v11, %v1696_v18  ;;  %v2176_v18 = vrot.slane %v3883_v41, %v1095_v8 }
 0x233   :  { %v1702_v20 = vpack.c.bf16 %v1697_v19, %v1697_v19  ;;  %2866 = vmatpush3.bf16.msra.mxu0 %v3130_v37  ;;  %v2287_v37 = vrot.slane %v3883_v41, %v1586_v22 }
 0x234   :  { %2867 = vmatprep.subr.bf16.mxu0 %v3411_v26 }
 0x235   :  { %2036 = vmatprep.mubr.bf16.mxu1 %v1702_v20 }
 0x236   :  { %2037 = vmatmul.mubr.bf16.vlgmr.msra.gmra.mrb[40].mxu1 %v1701_v24 }
 0x237   :  { %2868 = vmatpush3.bf16.msra.mxu0 %v3131_v3  ;;  %2891 = vmatprep.mubr.msk.bf16.mxu1 %vm3412_vm2, %v3411_v26 }
 0x238   :  { %2869 = vmatprep.subr.bf16.mxu0 %v3411_v26  ;;  %2876 = vmatpush3.bf16.msra.mxu1 %v3133_v36 }
 0x239   :  { %2877 = vmatprep.subr.bf16.mxu1 %v3411_v26 }
 0x23b   :  { %2870 = vmatpush3.bf16.msra.mxu0 %v3132_v16 }
 0x23c   :  { %2895 = vmatprep.subr.bf16.mxu0 %v3411_v26  ;;  %2878 = vmatpush3.bf16.msra.mxu1 %v3134_v38 }
 0x23d   :  { %2879 = vmatprep.subr.bf16.mxu1 %v3411_v26 }
 0x240   :  { %2880 = vmatpush3.bf16.msra.mxu1 %v3135_v33 }
 0x241   :  { %2881 = vmatprep.subr.bf16.mxu1 %v3411_v26 }
 0x244   :  { %2882 = vmatpush3.bf16.msra.mxu1 %v3136_v27 }
 0x245   :  { %2883 = vmatprep.subr.bf16.mxu1 %v3411_v26 }
 0x248   :  { %2884 = vmatpush3.bf16.msra.mxu1 %v3137_v39  ;;  %v2397_v39 = vsub.s32 4, %v3619_v59 }
 0x249   :  { %2885 = vmatprep.subr.bf16.mxu1 %v3411_v26 }
 0x24c   :  { %2886 = vmatpush3.bf16.msra.mxu1 %v3138_v44  ;;  %v2488_v44 = vand.u32 127, %v166_v56 }
 0x24d   :  { %2887 = vmatprep.subr.bf16.mxu1 %v3411_v26 }
 0x24e   :  { %vm2489_vm3 = vcmp.lt.s32.totalorder %v2488_v44, 4 }
 0x250   :  { %2888 = vmatpush3.bf16.msra.mxu1 %v3139_v29 }
 0x251   :  { %2889 = vmatprep.subr.bf16.mxu1 %v3411_v26 }
 0x254   :  { %2890 = vmatpush3.bf16.msra.mxu1 %v3140_v54 }
 0x255   :  { %2915 = vmatprep.subr.bf16.mxu1 %v3411_v26 }
 0x2c6   :  { %v2743_v30 = vpop.f32.mrb[40].mxu0 }
 0x2c7   :  { %v2744_v40 = vpop.f32.mrb[41].mxu0 }
 0x2c8   :  { %v2745_v43 = vadd.f32 %v2744_v40, %v2743_v30  ;;  %v2746_v7 = vpop.f32.mrb[42].mxu0 }
 0x2c9   :  { %v2747_v17 = vpop.f32.mrb[43].mxu0 }
 0x2ca   :  { %v1999_v50 = vadd.f32 %v2745_v43, %v1771_v55 }
 0x309   :  { %v2765_v49 = vpop.f32.mrb[40].mxu1 }
 0x30a   :  { %v2766_v42 = vpop.f32.mrb[41].mxu1 }
 0x30b   :  { %v2767_v35 = vadd.f32 %v2766_v42, %v2765_v49  ;;  %v2768_v34 = vpop.f32.mrb[42].mxu1 }
 0x30c   :  { %v2769_v28 = vpop.f32.mrb[43].mxu1 }
 0x30d   :  { %v2039_v52 = vadd.f32 %v2767_v35, %v1999_v50 }
 0x30f   :  { %v2044_v53 = vmax.f32 %v2039_v52, 0.0 }
 0x311   :  { %v2045_v48 = vpack.c.bf16 %v2044_v53, %v2044_v53 }
 0x313   :  { %2872 = vmatmul.mubr.bf16.vlgmr.msra.gmra.mrb[44].mxu0 %v2045_v48 }
 0x314   :  { %2911 = vmatprep.mubr.msk.bf16.mxu0 %vm3412_vm2, %v3411_v26  ;;  %2896 = vmatpush3.bf16.msra.mxu0 %v3141_v62 }
 0x315   :  { %2897 = vmatprep.subr.bf16.mxu0 %v3411_v26 }
 0x318   :  { %2898 = vmatpush3.bf16.msra.mxu0 %v3142_v60 }
 0x319   :  { %2899 = vmatprep.subr.bf16.mxu0 %v3411_v26 }
 0x31c   :  { %2900 = vmatpush3.bf16.msra.mxu0 %v3143_v61 }
 0x31d   :  { %2901 = vmatprep.subr.bf16.mxu0 %v3411_v26 }
 0x320   :  { %2902 = vmatpush3.bf16.msra.mxu0 %v3144_v23 }
 0x321   :  { %2903 = vmatprep.subr.bf16.mxu0 %v3411_v26 }
 0x324   :  { %2904 = vmatpush3.bf16.msra.mxu0 %v3145_v63 }
 0x325   :  { %2905 = vmatprep.subr.bf16.mxu0 %v3411_v26 }
 0x328   :  { %2906 = vmatpush3.bf16.msra.mxu0 %v3146_v46 }
 0x329   :  { %2907 = vmatprep.subr.bf16.mxu0 %v3411_v26 }
 0x32c   :  { %2908 = vmatpush3.bf16.msra.mxu0 %v3147_v12 }
 0x32d   :  { %2909 = vmatprep.subr.bf16.mxu0 %v3411_v26 }
 0x330   :  { %2910 = vmatpush3.bf16.msra.mxu0 %v3148_v58 }
 0x3e6   :  { %v2148_v4 = vpop.f32.mrb[44].mxu0 }
 0x3e7   :  { %v2149_v5 = vadd.f32 %v2148_v4, %v2065_v1  ;;  %v2873_v45 = vpop.f32.mrb[45].mxu0 }
 0x3e8   :  { %v2151_v57 = vpop.f32.mrb[46].mxu0 }
 0x3e9   :  { %v2154_v9 = vmax.f32 %v2149_v5, 0.0  ;;  %v2874_v10 = vpop.f32.mrb[47].mxu0 }
 0x3eb   :  { %v2155_v6 = vpack.c.bf16 %v2154_v9, %v2154_v9 }
 0x3ed   :  { %2892 = vmatmul.mubr.bf16.vlgmr.msra.gmra.mrb[44].mxu1 %v2155_v6 }
 0x3ee   :  { %2931 = vmatprep.mubr.msk.bf16.mxu1 %vm3412_vm2, %v3411_v26  ;;  %2916 = vmatpush3.bf16.msra.mxu1 %v3149_v0 }
 0x3ef   :  { %2917 = vmatprep.subr.bf16.mxu1 %v3411_v26 }
 0x3f2   :  { %2918 = vmatpush3.bf16.msra.mxu1 %v3150_v21 }
 0x3f3   :  { %2919 = vmatprep.subr.bf16.mxu1 %v3411_v26 }
 0x3f6   :  { %2920 = vmatpush3.bf16.msra.mxu1 %v3151_v51 }
 0x3f7   :  { %2921 = vmatprep.subr.bf16.mxu1 %v3411_v26 }
 0x3fa   :  { %2922 = vmatpush3.bf16.msra.mxu1 %v3152_v13 }
 0x3fb   :  { %2923 = vmatprep.subr.bf16.mxu1 %v3411_v26 }
 0x3fe   :  { %2924 = vmatpush3.bf16.msra.mxu1 %v3153_v15 }
 0x3ff   :  { %2925 = vmatprep.subr.bf16.mxu1 %v3411_v26 }
 0x402   :  { %2926 = vmatpush3.bf16.msra.mxu1 %v3154_v2 }
 0x403   :  { %2927 = vmatprep.subr.bf16.mxu1 %v3411_v26 }
 0x406   :  { %2928 = vmatpush3.bf16.msra.mxu1 %v3155_v14 }
 0x407   :  { %2929 = vmatprep.subr.bf16.mxu1 %v3411_v26  ;;  %v2398_v26 = vrot.slane %v3883_v41, %v2397_v39 }
 0x40a   :  { %2930 = vmatpush3.bf16.msra.mxu1 %v3156_v47 }
 0x4c0   :  { %v2259_v11 = vpop.f32.mrb[44].mxu1 }
 0x4c1   :  { %v2260_v19 = vadd.f32 %v2259_v11, %v2176_v18  ;;  %v2893_v20 = vpop.f32.mrb[45].mxu1 }
 0x4c2   :  { %v2262_v24 = vpop.f32.mrb[46].mxu1 }
 0x4c3   :  { %v2265_v25 = vmax.f32 %v2260_v19, 0.0  ;;  %v2894_v31 = vpop.f32.mrb[47].mxu1 }
 0x4c5   :  { %v2266_v32 = vpack.c.bf16 %v2265_v25, %v2265_v25 }
 0x4c7   :  { %2912 = vmatmul.mubr.bf16.vlgmr.msra.gmra.mrb[48].mxu0 %v2266_v32 }
 0x59a   :  { %v2370_v3 = vpop.f32.mrb[48].mxu0 }
 0x59b   :  { %v2371_v8 = vadd.f32 %v2370_v3, %v2287_v37  ;;  %v2913_v16 = vpop.f32.mrb[49].mxu0 }
 0x59c   :  { %v2373_v36 = vpop.f32.mrb[50].mxu0 }
 0x59d   :  { %v2376_v38 = vmax.f32 %v2371_v8, 0.0  ;;  %v2914_v33 = vpop.f32.mrb[51].mxu0 }
 0x59f   :  { %v2377_v27 = vpack.c.bf16 %v2376_v38, %v2376_v38 }
 0x5a1   :  { %2932 = vmatmul.mubr.bf16.vlgmr.msra.gmra.mrb[48].mxu1 %v2377_v27 }
 0x674   :  { %v2481_v30 = vpop.f32.mrb[48].mxu1 }
 0x675   :  { %v2482_v40 = vadd.f32 %v2481_v30, %v2398_v26  ;;  %v2933_v43 = vpop.f32.mrb[49].mxu1 }
 0x676   :  { %v2484_v22 = vpop.f32.mrb[50].mxu1 }
 0x677   :  { %v2934_v7 = vpop.f32.mrb[51].mxu1  ;;  %v2490_v17 = vsel %vm2489_vm3, %v2482_v40, -1e+30 }
 0x678   :  { %v2492_v55 = vsel %vm2491_vm4, %v2490_v17, -inf }
 0x679   :  { %2493 = vmax.xlane.f32.xlu0 %v2492_v55 }
 0x706   :  { %v2494_v49 = vpop.xlane.xlu0 %2493 }
 0x707   :  { %v2495_v42 = vsub.f32 %v2490_v17, %v2494_v49 }
 0x709   :  { %v2496_v50 = vmul.f32 1.442695, %v2495_v42 }
 0x70b   :  { %3157 = vpow2.f32 %v2496_v50 }
 0x715   :  { %v3158_v35 = vpop.eup %3157 }
 0x716   :  { %v2498_v59 = vsel %vm2491_vm4, %v3158_v35, 0.0 }
 0x717   :  { %2499 = vadd.xlane.f32.xlu0 %v2498_v59 }
 0x7a4   :  { %v2500_v56 = vpop.xlane.xlu0 %2499 }
 0x7a5   :  { %3159 = vlog2.f32 %v2500_v56 }
 0x7af   :  { %v3160_v41 = vpop.eup %3159 }
 0x7b0   :  { %v2502_v34 = vmul.f32 0.6931472, %v3160_v41 }
 0x7b2   :  { %v2503_v28 = vadd.f32 %v2502_v34, %v2494_v49 }
 0x7b4   :  { %v2504_v52 = vsub.f32 %v2490_v17, %v2503_v28 }
 0x7b6   :  { %2505 = vst [vmem:[#allocation15] sm:$0xf] %v2504_v52 }
 0x7b7   :  { %3342 = shalt.err (!%p3339_p7)
}
 0x7b8   :  { %s3343_s3 = scalar_lea.hbm %s3939_s7, 64 }
 0x7b9   :  { %p3344_p8 = scmp.ne.s32.totalorder %s3939_s7, %s3343_s3  ;;  %p3347_p9 = scmp.lt.u32.totalorder %s3343_s3, %s3939_s7 }
 0x7bb   :  { %p3349_p10 = pnand %p3347_p9, %p3344_p8 }
 0x7bd   :  { %3352 = shalt.err (!%p3349_p10)
}
 0x7be   :  { %2515 = dma.vmem_to_hbm [thread:$0]  %s2513_s24, 64, %s3939_s7, [#allocation8]  }
 0x7bf   :  { %3381 = dma.done.wait [#allocation8], 64  }
 0x7c0   :  { %3382 = vsyncadd [#allocation8], 4294967232 }
 0x7c1   :  { %2519 = vsyncpa [#allocation7], 1 }
 0x7c2   :  { %2520 = vsyncpa [#allocation10], 1 }
 0x7c3   :  { %2521 = vsyncpa [#allocation13], 1 }
 0x7c4   :  { %2522 = vsyncpa [#allocation8], 1 }
 0x7c5   :  { %2523 = vsyncmov [#allocation3] }
 0x7c8   :  { %s2524_s10 = vpop.sfrf %2523 }
 0x7c9   :  { %p2702_p11 = scmp.ne.s32.totalorder %s2524_s10, 0 }
 0x7cb   :  { %2528 = shalt.err (%p2702_p11)  }

</bundles_post_ra>
